<compile_context>
chip_gen: v7x
topology: tpu7x:2x2x1
jax: 0.10.0
libtpu: 0.0.40
codegen_flags: <defaults>
</compile_context>

<pallas_src>
import jax
import jax.numpy as jnp
from jax.experimental import pallas as pl
from jax.experimental.pallas import tpu as pltpu

LANE = 128


def _round_up(n, m):
    return ((n + m - 1) // m) * m


def _cdiv(a, b):
    return -(-a // b)


# ------------------------------ kernel factory --------------------------------

def make_vae_kernel(h_true, h_pad, c_pad):
    """Fused forward kernel, specialized on (true H, padded H, padded C)."""
    mask_ln = (h_pad != h_true)  # only needed if hidden_dim is not a 128 multiple

    def _leaky(v):  # nn.LeakyReLU(0.2)
        return jnp.where(v > 0, v, 0.2 * v)

    def _layernorm(v, g, b):  # nn.LayerNorm(hidden_dim), eps=1e-5, biased variance
        # E[x^2] - mean^2 form: the two cross-lane reductions are independent,
        # so the (2x) XLUs can overlap them.
        if mask_ln:
            lane = jax.lax.broadcasted_iota(jnp.int32, v.shape, 1)
            m = (lane < h_true).astype(v.dtype)
            vm = v * m
            s1 = jnp.sum(vm, axis=-1, keepdims=True)
            s2 = jnp.sum(vm * vm, axis=-1, keepdims=True)
        else:
            s1 = jnp.sum(v, axis=-1, keepdims=True)
            s2 = jnp.sum(v * v, axis=-1, keepdims=True)
        inv_n = 1.0 / float(h_true)
        mean = s1 * inv_n
        var = s2 * inv_n - mean * mean
        # padded lanes have g = 0, b = 0 -> output exactly 0 there
        return (v - mean) * jax.lax.rsqrt(var + 1e-5) * g + b

    def kernel(
        # data (tiled over batch): bf16, lanes [0,D)=x, [Cp/2, Cp/2+C)=eps
        xe_ref,
        # encoder block1 / block2
        e_w1, e_b1, e_g1, e_be1,
        e_w2, e_b2, e_g2, e_be2,
        # encoder attention
        e_aw1, e_ab1, e_aw2, e_ab2,
        # fused fc_mu / fc_logvar head (mu cols [0,C), logvar cols [Cp/2, Cp/2+C))
        w_mulv, b_mulv,
        # decoder block1 / block2
        d_w1, d_b1, d_g1, d_be1,
        d_w2, d_b2, d_g2, d_be2,
        # decoder attention
        d_aw1, d_ab1, d_aw2, d_ab2,
        # output layer
        w_out, b_out,
        # outputs
        rec_ref, mulv_ref,
    ):
        def lin(v, w, b):
            # bf16 operands on the MXU, f32 accumulation; bias add stays f32.
            return jnp.dot(v.astype(jnp.bfloat16), w[...],
                           preferred_element_type=jnp.float32) + b[...]

        xe = xe_ref[...]                                          # (TB, Dp) bf16

        # ------------------------------ encode ------------------------------
        # eps lanes hit zero-padded rows of e_w1, so they never perturb h1.
        h1 = _leaky(_layernorm(lin(xe, e_w1, e_b1), e_g1[...], e_be1[...]))
        h2 = _leaky(_layernorm(lin(h1, e_w2, e_b2), e_g2[...], e_be2[...]))
        h2 = h1 + h2                                              # residual (f32)
        att = jax.nn.sigmoid(lin(_leaky(lin(h2, e_aw1, e_ab1)), e_aw2, e_ab2))
        ha = h2 * att

        # fused latent head: (TB, Cp); mu at lanes [0,C), logvar at [Cp/2, Cp/2+C)
        mulv = lin(ha, w_mulv, b_mulv)

        # -------------------------- reparameterize ---------------------------
        # eps (xe lanes [Cp/2, Cp/2+C)) is already lane-aligned with logvar, so
        # eps*std forms in place; one half-width roll (XLU slot) moves it onto
        # the mu lanes.  Lanes >= C of z are finite garbage that only ever
        # multiplies zero-padded decoder weight rows.
        eps_lanes = xe[:, :c_pad].astype(jnp.float32)
        t = eps_lanes * jnp.exp(0.5 * mulv)
        z = mulv + pltpu.roll(t, shift=c_pad // 2, axis=1)

        # ------------------------------ decode ------------------------------
        g1 = _leaky(_layernorm(lin(z, d_w1, d_b1), d_g1[...], d_be1[...]))
        g2 = _leaky(_layernorm(lin(g1, d_w2, d_b2), d_g2[...], d_be2[...]))
        g2 = g1 + g2                                              # residual (f32)
        datt = jax.nn.sigmoid(lin(_leaky(lin(g2, d_aw1, d_ab1)), d_aw2, d_ab2))
        ga = g2 * datt
        rec = lin(ga, w_out, b_out)                               # (TB, Dp)

        rec_ref[...] = rec.astype(rec_ref.dtype)                  # bf16 writeback
        mulv_ref[...] = mulv                                      # f32 [mu | logvar]

    return kernel


# ------------------------------ JAX wrapper ------------------------------------

def _pick_vmem_limit_bytes():
    # v5e/v6e have 128 MiB physical VMEM (-> ~96 MiB scoped), v7x only 64 MiB
    # (-> ~48 MiB).  Fall back to a conservative 48 MiB if the query fails.
    try:
        cap = int(pltpu.get_tpu_info().vmem_capacity_bytes)
    except Exception:  # any failure -> safe-everywhere default
        cap = 64 * 1024 * 1024
    return min((cap * 3) // 4, 96 * 1024 * 1024)


def build_vae_forward(input_dim, compressed_dim, hidden_dim, batch_tile=512):
    """Builds a jitted forward(x, eps, params) -> (reconstructed, mu, logvar)."""
    D, C, H = input_dim, compressed_dim, hidden_dim
    Hq = H // 4
    Dp = _round_up(D, LANE)
    Cp = _round_up(C, LANE)
    Hp = _round_up(H, LANE)
    Hqp = _round_up(Hq, LANE)

    # Packed-head / packed-eps layout preconditions (hold for the demo dims).
    # TODO(synk): general fallback (separate eps stream + (Hp, 2*Cp) head) for
    # configs with compressed_dim > 64 or input_dim > 64.
    assert 2 * C <= LANE, "packed mu|logvar head requires 2*compressed_dim <= 128"
    assert D <= Cp // 2, "eps packing into the x block requires input_dim <= 64"

    kernel = make_vae_kernel(H, Hp, Cp)
    vmem_limit = _pick_vmem_limit_bytes()

    @jax.jit
    def forward(x, eps, params):
        B = x.shape[0]
        # Adaptive tile: < 1 tile of batch padding, TB a multiple of 16 (clean
        # bf16 sublane packing), and >= 2 grid steps once B > 256 so the v7x
        # megacore "parallel" axis actually has work for both TensorCores.
        n_steps = max(1, _cdiv(B, batch_tile))
        if B > 256:
            n_steps = max(n_steps, 2)
        TB = _round_up(_cdiv(B, n_steps), 16)
        Bp = TB * n_steps

        co = Cp // 2
        # Combined input block: x in lanes [0,D), eps in lanes [co, co+C), bf16.
        xe = (jnp.zeros((Bp, Dp), jnp.bfloat16)
              .at[:B, :D].set(x.astype(jnp.bfloat16))
              .at[:B, co:co + C].set(eps.astype(jnp.bfloat16)))

        data_specs = [pl.BlockSpec((TB, Dp), lambda i: (i, 0))]
        # weights/biases: full-array blocks, same block index every step -> VMEM-resident
        weight_specs = [pl.BlockSpec(p.shape, lambda i: (0, 0)) for p in params]

        out_shape = (
            jax.ShapeDtypeStruct((Bp, Dp), jnp.bfloat16),     # reconstructed (padded)
            jax.ShapeDtypeStruct((Bp, Cp), jnp.float32),      # packed [mu | logvar]
        )
        out_specs = [
            pl.BlockSpec((TB, Dp), lambda i: (i, 0)),
            pl.BlockSpec((TB, Cp), lambda i: (i, 0)),
        ]

        weight_bytes = sum(int(p.size) * p.dtype.itemsize for p in params)
        flops = 2 * Bp * (
            Dp * Hp + Hp * Hp            # encoder block1/2
            + Hp * Hqp + Hqp * Hp        # encoder attention
            + Hp * Cp                    # fused mu/logvar head (single 128-lane block)
            + Cp * Hp + Hp * Hp          # decoder block1/2
            + Hp * Hqp + Hqp * Hp        # decoder attention
            + Hp * Dp                    # output layer
        )
        cost = pl.CostEstimate(
            flops=int(flops),
            transcendentals=int(Bp * (Cp + 2 * Hp)),
            bytes_accessed=int(weight_bytes + Bp * (2 * Dp + 2 * Dp + 4 * Cp)),
        )

        recp, mulvp = pl.pallas_call(
            kernel,
            out_shape=out_shape,
            grid_spec=pltpu.PrefetchScalarGridSpec(
                num_scalar_prefetch=0,
                grid=(Bp // TB,),
                in_specs=data_specs + weight_specs,
                out_specs=out_specs,
            ),
            compiler_params=pltpu.CompilerParams(
                dimension_semantics=("parallel",),   # second TC on v7x; no-op on v5e/v6e
                vmem_limit_bytes=vmem_limit,
            ),
            cost_estimate=cost,
        )(xe, *params)

        rec = recp[:B, :D].astype(jnp.float32)
        mu = mulvp[:B, :C]
        logvar = mulvp[:B, co:co + C]
        return rec, mu, logvar

    return forward


# ------------------------------- parameters ------------------------------------

def init_params(key, input_dim, compressed_dim, hidden_dim):
    """Padded, bf16 weights (real xavier_normal gain=0.7 block, zero padding)."""
    D, C, H = input_dim, compressed_dim, hidden_dim
    Hq = H // 4
    Dp, Cp, Hp, Hqp = (_round_up(v, LANE) for v in (D, C, H, Hq))

    keys = iter(jax.random.split(key, 16))

    def xavier(fi, fo, gain=0.7):
        std = gain * (2.0 / (fi + fo)) ** 0.5
        return jax.random.normal(next(keys), (fi, fo), jnp.float32) * std

    def lin(fi, fo, fip, fop):
        w = jnp.zeros((fip, fop), jnp.float32).at[:fi, :fo].set(xavier(fi, fo))
        b = jnp.zeros((1, fop), jnp.float32)
        return w.astype(jnp.bfloat16), b

    def ln(dim, dimp):
        g = jnp.zeros((1, dimp), jnp.float32).at[:, :dim].set(1.0)
        be = jnp.zeros((1, dimp), jnp.float32)
        return g, be

    params = []
    # encoder block1 / block2
    params += [*lin(D, H, Dp, Hp), *ln(H, Hp)]
    params += [*lin(H, H, Hp, Hp), *ln(H, Hp)]
    # encoder attention
    params += [*lin(H, Hq, Hp, Hqp), *lin(Hq, H, Hqp, Hp)]
    # fused fc_mu / fc_logvar packed into ONE 128-lane head:
    #   mu -> cols [0, C), logvar -> cols [Cp/2, Cp/2 + C); padded cols/bias stay 0
    #   (the kernel's reparameterize packing relies on those padded lanes = 0).
    w_mu = xavier(H, C)
    w_lv = xavier(H, C)
    w_mulv = (jnp.zeros((Hp, Cp), jnp.float32)
              .at[:H, :C].set(w_mu)
              .at[:H, Cp // 2:Cp // 2 + C].set(w_lv))
    params += [w_mulv.astype(jnp.bfloat16), jnp.zeros((1, Cp), jnp.float32)]
    # decoder block1 / block2
    params += [*lin(C, H, Cp, Hp), *ln(H, Hp)]
    params += [*lin(H, H, Hp, Hp), *ln(H, Hp)]
    # decoder attention
    params += [*lin(H, Hq, Hp, Hqp), *lin(Hq, H, Hqp, Hp)]
    # output layer
    params += [*lin(H, D, Hp, Dp)]
    return tuple(params)


# ---------------------------------- main ----------------------------------------

if __name__ == "__main__":
    # input_dim=64 -> hidden_dim = min(1024, 2*64) = 128, compressed_dim=32, batch=8
    B, INPUT_DIM, COMPRESSED_DIM = 8, 64, 32
    HIDDEN_DIM = min(1024, INPUT_DIM * 2)

    root = jax.random.PRNGKey(0)
    k_x, k_eps, k_params = jax.random.split(root, 3)

    x = jax.random.normal(k_x, (B, INPUT_DIM), jnp.float32)
    # eps for the reparameterization trick (torch.randn_like(std) in the module)
    eps = jax.random.normal(k_eps, (B, COMPRESSED_DIM), jnp.float32)
    params = init_params(k_params, INPUT_DIM, COMPRESSED_DIM, HIDDEN_DIM)

    forward = build_vae_forward(INPUT_DIM, COMPRESSED_DIM, HIDDEN_DIM)
    reconstructed, mu, logvar = forward(x, eps, params)
    jax.block_until_ready((reconstructed, mu, logvar))

    assert reconstructed.shape == (B, INPUT_DIM)
    assert mu.shape == (B, COMPRESSED_DIM)
    assert logvar.shape == (B, COMPRESSED_DIM)
    assert bool(jnp.all(jnp.isfinite(reconstructed)))
    assert bool(jnp.all(jnp.isfinite(mu)))
    assert bool(jnp.all(jnp.isfinite(logvar)))

    # TODO(synk): calculate_semantic_entropy / get_dynamic_compression_dim /
    # compress_with_dynamic_ratio are host-side numpy+logging heuristics outside
    # the forward pass; not kernelized.

    print("KERNEL_OK")
</pallas_src>

<mosaic_0001>
module attributes {stable_mosaic.version = 11 : i64} {
  func.func @kernel(%arg0: i32, %arg1: memref<16x128xbf16, #tpu.memory_space<vmem>>, %arg2: memref<128x128xbf16, #tpu.memory_space<vmem>>, %arg3: memref<1x128xf32, #tpu.memory_space<vmem>>, %arg4: memref<1x128xf32, #tpu.memory_space<vmem>>, %arg5: memref<1x128xf32, #tpu.memory_space<vmem>>, %arg6: memref<128x128xbf16, #tpu.memory_space<vmem>>, %arg7: memref<1x128xf32, #tpu.memory_space<vmem>>, %arg8: memref<1x128xf32, #tpu.memory_space<vmem>>, %arg9: memref<1x128xf32, #tpu.memory_space<vmem>>, %arg10: memref<128x128xbf16, #tpu.memory_space<vmem>>, %arg11: memref<1x128xf32, #tpu.memory_space<vmem>>, %arg12: memref<128x128xbf16, #tpu.memory_space<vmem>>, %arg13: memref<1x128xf32, #tpu.memory_space<vmem>>, %arg14: memref<128x128xbf16, #tpu.memory_space<vmem>>, %arg15: memref<1x128xf32, #tpu.memory_space<vmem>>, %arg16: memref<128x128xbf16, #tpu.memory_space<vmem>>, %arg17: memref<1x128xf32, #tpu.memory_space<vmem>>, %arg18: memref<1x128xf32, #tpu.memory_space<vmem>>, %arg19: memref<1x128xf32, #tpu.memory_space<vmem>>, %arg20: memref<128x128xbf16, #tpu.memory_space<vmem>>, %arg21: memref<1x128xf32, #tpu.memory_space<vmem>>, %arg22: memref<1x128xf32, #tpu.memory_space<vmem>>, %arg23: memref<1x128xf32, #tpu.memory_space<vmem>>, %arg24: memref<128x128xbf16, #tpu.memory_space<vmem>>, %arg25: memref<1x128xf32, #tpu.memory_space<vmem>>, %arg26: memref<128x128xbf16, #tpu.memory_space<vmem>>, %arg27: memref<1x128xf32, #tpu.memory_space<vmem>>, %arg28: memref<128x128xbf16, #tpu.memory_space<vmem>>, %arg29: memref<1x128xf32, #tpu.memory_space<vmem>>, %arg30: memref<16x128xbf16, #tpu.memory_space<vmem>>, %arg31: memref<16x128xf32, #tpu.memory_space<vmem>>) attributes {dimension_semantics = [#tpu.dimension_semantics<parallel>], iteration_bounds = array<i64: 1>, scalar_prefetch = 0 : i64, scratch_operands = 0 : i64, tpu.core_type = #tpu.core_type<tc>, window_params = [{transform_indices = @transform_0, window_bounds = array<i64: 16, 128>}, {pipeline_mode = #tpu.pipeline_mode<synchronous>, transform_indices = @transform_1, window_bounds = array<i64: 128, 128>}, {pipeline_mode = #tpu.pipeline_mode<synchronous>, transform_indices = @transform_2, window_bounds = array<i64: 1, 128>}, {pipeline_mode = #tpu.pipeline_mode<synchronous>, transform_indices = @transform_3, window_bounds = array<i64: 1, 128>}, {pipeline_mode = #tpu.pipeline_mode<synchronous>, transform_indices = @transform_4, window_bounds = array<i64: 1, 128>}, {pipeline_mode = #tpu.pipeline_mode<synchronous>, transform_indices = @transform_5, window_bounds = array<i64: 128, 128>}, {pipeline_mode = #tpu.pipeline_mode<synchronous>, transform_indices = @transform_6, window_bounds = array<i64: 1, 128>}, {pipeline_mode = #tpu.pipeline_mode<synchronous>, transform_indices = @transform_7, window_bounds = array<i64: 1, 128>}, {pipeline_mode = #tpu.pipeline_mode<synchronous>, transform_indices = @transform_8, window_bounds = array<i64: 1, 128>}, {pipeline_mode = #tpu.pipeline_mode<synchronous>, transform_indices = @transform_9, window_bounds = array<i64: 128, 128>}, {pipeline_mode = #tpu.pipeline_mode<synchronous>, transform_indices = @transform_10, window_bounds = array<i64: 1, 128>}, {pipeline_mode = #tpu.pipeline_mode<synchronous>, transform_indices = @transform_11, window_bounds = array<i64: 128, 128>}, {pipeline_mode = #tpu.pipeline_mode<synchronous>, transform_indices = @transform_12, window_bounds = array<i64: 1, 128>}, {pipeline_mode = #tpu.pipeline_mode<synchronous>, transform_indices = @transform_13, window_bounds = array<i64: 128, 128>}, {pipeline_mode = #tpu.pipeline_mode<synchronous>, transform_indices = @transform_14, window_bounds = array<i64: 1, 128>}, {pipeline_mode = #tpu.pipeline_mode<synchronous>, transform_indices = @transform_15, window_bounds = array<i64: 128, 128>}, {pipeline_mode = #tpu.pipeline_mode<synchronous>, transform_indices = @transform_16, window_bounds = array<i64: 1, 128>}, {pipeline_mode = #tpu.pipeline_mode<synchronous>, transform_indices = @transform_17, window_bounds = array<i64: 1, 128>}, {pipeline_mode = #tpu.pipeline_mode<synchronous>, transform_indices = @transform_18, window_bounds = array<i64: 1, 128>}, {pipeline_mode = #tpu.pipeline_mode<synchronous>, transform_indices = @transform_19, window_bounds = array<i64: 128, 128>}, {pipeline_mode = #tpu.pipeline_mode<synchronous>, transform_indices = @transform_20, window_bounds = array<i64: 1, 128>}, {pipeline_mode = #tpu.pipeline_mode<synchronous>, transform_indices = @transform_21, window_bounds = array<i64: 1, 128>}, {pipeline_mode = #tpu.pipeline_mode<synchronous>, transform_indices = @transform_22, window_bounds = array<i64: 1, 128>}, {pipeline_mode = #tpu.pipeline_mode<synchronous>, transform_indices = @transform_23, window_bounds = array<i64: 128, 128>}, {pipeline_mode = #tpu.pipeline_mode<synchronous>, transform_indices = @transform_24, window_bounds = array<i64: 1, 128>}, {pipeline_mode = #tpu.pipeline_mode<synchronous>, transform_indices = @transform_25, window_bounds = array<i64: 128, 128>}, {pipeline_mode = #tpu.pipeline_mode<synchronous>, transform_indices = @transform_26, window_bounds = array<i64: 1, 128>}, {pipeline_mode = #tpu.pipeline_mode<synchronous>, transform_indices = @transform_27, window_bounds = array<i64: 128, 128>}, {pipeline_mode = #tpu.pipeline_mode<synchronous>, transform_indices = @transform_28, window_bounds = array<i64: 1, 128>}, {transform_indices = @transform_29, window_bounds = array<i64: 16, 128>}, {transform_indices = @transform_30, window_bounds = array<i64: 16, 128>}]} {
    %c0 = arith.constant 0 : index
    %c0_0 = arith.constant 0 : index
    %0 = vector.load %arg1[%c0, %c0_0] : memref<16x128xbf16, #tpu.memory_space<vmem>>, vector<16x128xbf16>
    %c0_1 = arith.constant 0 : index
    %c0_2 = arith.constant 0 : index
    %1 = vector.load %arg2[%c0_1, %c0_2] : memref<128x128xbf16, #tpu.memory_space<vmem>>, vector<128x128xbf16>
    %cst = arith.constant dense<0.000000e+00> : vector<16x128xf32>
    %2 = tpu.matmul %0, %1, %cst {dimension_numbers = #tpu.dot_dimension_numbers<[1], [0], [0], [1], [0, 0, 1, 1], [], []>} : vector<16x128xbf16>, vector<128x128xbf16>, vector<16x128xf32> -> vector<16x128xf32>
    %c0_3 = arith.constant 0 : index
    %c0_4 = arith.constant 0 : index
    %3 = vector.load %arg3[%c0_3, %c0_4] : memref<1x128xf32, #tpu.memory_space<vmem>>, vector<1x128xf32>
    %4 = vector.broadcast %3 : vector<1x128xf32> to vector<16x128xf32>
    %5 = arith.addf %2, %4 : vector<16x128xf32>
    %c0_5 = arith.constant 0 : index
    %c0_6 = arith.constant 0 : index
    %6 = vector.load %arg4[%c0_5, %c0_6] : memref<1x128xf32, #tpu.memory_space<vmem>>, vector<1x128xf32>
    %c0_7 = arith.constant 0 : index
    %c0_8 = arith.constant 0 : index
    %7 = vector.load %arg5[%c0_7, %c0_8] : memref<1x128xf32, #tpu.memory_space<vmem>>, vector<1x128xf32>
    %cst_9 = arith.constant dense<0.000000e+00> : vector<16xf32>
    %8 = vector.multi_reduction <add>, %5, %cst_9 [1] : vector<16x128xf32> to vector<16xf32>
    %9 = vector.shape_cast %8 : vector<16xf32> to vector<16x1xf32>
    %10 = arith.mulf %5, %5 : vector<16x128xf32>
    %cst_10 = arith.constant dense<0.000000e+00> : vector<16xf32>
    %11 = vector.multi_reduction <add>, %10, %cst_10 [1] : vector<16x128xf32> to vector<16xf32>
    %12 = vector.shape_cast %11 : vector<16xf32> to vector<16x1xf32>
    %cst_11 = arith.constant 7.812500e-03 : f32
    %13 = vector.broadcast %cst_11 : f32 to vector<16x1xf32>
    %14 = arith.mulf %9, %13 : vector<16x1xf32>
    %cst_12 = arith.constant 7.812500e-03 : f32
    %15 = vector.broadcast %cst_12 : f32 to vector<16x1xf32>
    %16 = arith.mulf %12, %15 : vector<16x1xf32>
    %17 = arith.mulf %14, %14 : vector<16x1xf32>
    %18 = arith.subf %16, %17 : vector<16x1xf32>
    %19 = vector.broadcast %14 : vector<16x1xf32> to vector<16x128xf32>
    %20 = arith.subf %5, %19 : vector<16x128xf32>
    %cst_13 = arith.constant 9.99999974E-6 : f32
    %21 = vector.broadcast %cst_13 : f32 to vector<16x1xf32>
    %22 = arith.addf %18, %21 : vector<16x1xf32>
    %23 = math.rsqrt %22 : vector<16x1xf32>
    %24 = vector.broadcast %23 : vector<16x1xf32> to vector<16x128xf32>
    %25 = arith.mulf %20, %24 : vector<16x128xf32>
    %26 = vector.broadcast %6 : vector<1x128xf32> to vector<16x128xf32>
    %27 = arith.mulf %25, %26 : vector<16x128xf32>
    %28 = vector.broadcast %7 : vector<1x128xf32> to vector<16x128xf32>
    %29 = arith.addf %27, %28 : vector<16x128xf32>
    %cst_14 = arith.constant 0.000000e+00 : f32
    %30 = vector.broadcast %cst_14 : f32 to vector<16x128xf32>
    %31 = arith.cmpf ogt, %29, %30 : vector<16x128xf32>
    %cst_15 = arith.constant 2.000000e-01 : f32
    %32 = vector.broadcast %cst_15 : f32 to vector<16x128xf32>
    %33 = arith.mulf %32, %29 : vector<16x128xf32>
    %34 = arith.select %31, %29, %33 : vector<16x128xi1>, vector<16x128xf32>
    %35 = arith.truncf %34 : vector<16x128xf32> to vector<16x128xbf16>
    %c0_16 = arith.constant 0 : index
    %c0_17 = arith.constant 0 : index
    %36 = vector.load %arg6[%c0_16, %c0_17] : memref<128x128xbf16, #tpu.memory_space<vmem>>, vector<128x128xbf16>
    %cst_18 = arith.constant dense<0.000000e+00> : vector<16x128xf32>
    %37 = tpu.matmul %35, %36, %cst_18 {dimension_numbers = #tpu.dot_dimension_numbers<[1], [0], [0], [1], [0, 0, 1, 1], [], []>} : vector<16x128xbf16>, vector<128x128xbf16>, vector<16x128xf32> -> vector<16x128xf32>
    %c0_19 = arith.constant 0 : index
    %c0_20 = arith.constant 0 : index
    %38 = vector.load %arg7[%c0_19, %c0_20] : memref<1x128xf32, #tpu.memory_space<vmem>>, vector<1x128xf32>
    %39 = vector.broadcast %38 : vector<1x128xf32> to vector<16x128xf32>
    %40 = arith.addf %37, %39 : vector<16x128xf32>
    %c0_21 = arith.constant 0 : index
    %c0_22 = arith.constant 0 : index
    %41 = vector.load %arg8[%c0_21, %c0_22] : memref<1x128xf32, #tpu.memory_space<vmem>>, vector<1x128xf32>
    %c0_23 = arith.constant 0 : index
    %c0_24 = arith.constant 0 : index
    %42 = vector.load %arg9[%c0_23, %c0_24] : memref<1x128xf32, #tpu.memory_space<vmem>>, vector<1x128xf32>
    %cst_25 = arith.constant dense<0.000000e+00> : vector<16xf32>
    %43 = vector.multi_reduction <add>, %40, %cst_25 [1] : vector<16x128xf32> to vector<16xf32>
    %44 = vector.shape_cast %43 : vector<16xf32> to vector<16x1xf32>
    %45 = arith.mulf %40, %40 : vector<16x128xf32>
    %cst_26 = arith.constant dense<0.000000e+00> : vector<16xf32>
    %46 = vector.multi_reduction <add>, %45, %cst_26 [1] : vector<16x128xf32> to vector<16xf32>
    %47 = vector.shape_cast %46 : vector<16xf32> to vector<16x1xf32>
    %cst_27 = arith.constant 7.812500e-03 : f32
    %48 = vector.broadcast %cst_27 : f32 to vector<16x1xf32>
    %49 = arith.mulf %44, %48 : vector<16x1xf32>
    %cst_28 = arith.constant 7.812500e-03 : f32
    %50 = vector.broadcast %cst_28 : f32 to vector<16x1xf32>
    %51 = arith.mulf %47, %50 : vector<16x1xf32>
    %52 = arith.mulf %49, %49 : vector<16x1xf32>
    %53 = arith.subf %51, %52 : vector<16x1xf32>
    %54 = vector.broadcast %49 : vector<16x1xf32> to vector<16x128xf32>
    %55 = arith.subf %40, %54 : vector<16x128xf32>
    %cst_29 = arith.constant 9.99999974E-6 : f32
    %56 = vector.broadcast %cst_29 : f32 to vector<16x1xf32>
    %57 = arith.addf %53, %56 : vector<16x1xf32>
    %58 = math.rsqrt %57 : vector<16x1xf32>
    %59 = vector.broadcast %58 : vector<16x1xf32> to vector<16x128xf32>
    %60 = arith.mulf %55, %59 : vector<16x128xf32>
    %61 = vector.broadcast %41 : vector<1x128xf32> to vector<16x128xf32>
    %62 = arith.mulf %60, %61 : vector<16x128xf32>
    %63 = vector.broadcast %42 : vector<1x128xf32> to vector<16x128xf32>
    %64 = arith.addf %62, %63 : vector<16x128xf32>
    %cst_30 = arith.constant 0.000000e+00 : f32
    %65 = vector.broadcast %cst_30 : f32 to vector<16x128xf32>
    %66 = arith.cmpf ogt, %64, %65 : vector<16x128xf32>
    %cst_31 = arith.constant 2.000000e-01 : f32
    %67 = vector.broadcast %cst_31 : f32 to vector<16x128xf32>
    %68 = arith.mulf %67, %64 : vector<16x128xf32>
    %69 = arith.select %66, %64, %68 : vector<16x128xi1>, vector<16x128xf32>
    %70 = arith.addf %34, %69 : vector<16x128xf32>
    %71 = arith.truncf %70 : vector<16x128xf32> to vector<16x128xbf16>
    %c0_32 = arith.constant 0 : index
    %c0_33 = arith.constant 0 : index
    %72 = vector.load %arg10[%c0_32, %c0_33] : memref<128x128xbf16, #tpu.memory_space<vmem>>, vector<128x128xbf16>
    %cst_34 = arith.constant dense<0.000000e+00> : vector<16x128xf32>
    %73 = tpu.matmul %71, %72, %cst_34 {dimension_numbers = #tpu.dot_dimension_numbers<[1], [0], [0], [1], [0, 0, 1, 1], [], []>} : vector<16x128xbf16>, vector<128x128xbf16>, vector<16x128xf32> -> vector<16x128xf32>
    %c0_35 = arith.constant 0 : index
    %c0_36 = arith.constant 0 : index
    %74 = vector.load %arg11[%c0_35, %c0_36] : memref<1x128xf32, #tpu.memory_space<vmem>>, vector<1x128xf32>
    %75 = vector.broadcast %74 : vector<1x128xf32> to vector<16x128xf32>
    %76 = arith.addf %73, %75 : vector<16x128xf32>
    %cst_37 = arith.constant 0.000000e+00 : f32
    %77 = vector.broadcast %cst_37 : f32 to vector<16x128xf32>
    %78 = arith.cmpf ogt, %76, %77 : vector<16x128xf32>
    %cst_38 = arith.constant 2.000000e-01 : f32
    %79 = vector.broadcast %cst_38 : f32 to vector<16x128xf32>
    %80 = arith.mulf %79, %76 : vector<16x128xf32>
    %81 = arith.select %78, %76, %80 : vector<16x128xi1>, vector<16x128xf32>
    %82 = arith.truncf %81 : vector<16x128xf32> to vector<16x128xbf16>
    %c0_39 = arith.constant 0 : index
    %c0_40 = arith.constant 0 : index
    %83 = vector.load %arg12[%c0_39, %c0_40] : memref<128x128xbf16, #tpu.memory_space<vmem>>, vector<128x128xbf16>
    %cst_41 = arith.constant dense<0.000000e+00> : vector<16x128xf32>
    %84 = tpu.matmul %82, %83, %cst_41 {dimension_numbers = #tpu.dot_dimension_numbers<[1], [0], [0], [1], [0, 0, 1, 1], [], []>} : vector<16x128xbf16>, vector<128x128xbf16>, vector<16x128xf32> -> vector<16x128xf32>
    %c0_42 = arith.constant 0 : index
    %c0_43 = arith.constant 0 : index
    %85 = vector.load %arg13[%c0_42, %c0_43] : memref<1x128xf32, #tpu.memory_space<vmem>>, vector<1x128xf32>
    %86 = vector.broadcast %85 : vector<1x128xf32> to vector<16x128xf32>
    %87 = arith.addf %84, %86 : vector<16x128xf32>
    %88 = arith.negf %87 : vector<16x128xf32>
    %89 = math.exp %88 : vector<16x128xf32>
    %cst_44 = arith.constant 1.000000e+00 : f32
    %90 = vector.broadcast %cst_44 : f32 to vector<16x128xf32>
    %91 = arith.addf %90, %89 : vector<16x128xf32>
    %92 = arith.divf %90, %91 : vector<16x128xf32>
    %93 = arith.mulf %70, %92 : vector<16x128xf32>
    %94 = arith.truncf %93 : vector<16x128xf32> to vector<16x128xbf16>
    %c0_45 = arith.constant 0 : index
    %c0_46 = arith.constant 0 : index
    %95 = vector.load %arg14[%c0_45, %c0_46] : memref<128x128xbf16, #tpu.memory_space<vmem>>, vector<128x128xbf16>
    %cst_47 = arith.constant dense<0.000000e+00> : vector<16x128xf32>
    %96 = tpu.matmul %94, %95, %cst_47 {dimension_numbers = #tpu.dot_dimension_numbers<[1], [0], [0], [1], [0, 0, 1, 1], [], []>} : vector<16x128xbf16>, vector<128x128xbf16>, vector<16x128xf32> -> vector<16x128xf32>
    %c0_48 = arith.constant 0 : index
    %c0_49 = arith.constant 0 : index
    %97 = vector.load %arg15[%c0_48, %c0_49] : memref<1x128xf32, #tpu.memory_space<vmem>>, vector<1x128xf32>
    %98 = vector.broadcast %97 : vector<1x128xf32> to vector<16x128xf32>
    %99 = arith.addf %96, %98 : vector<16x128xf32>
    %100 = arith.extf %0 : vector<16x128xbf16> to vector<16x128xf32>
    %cst_50 = arith.constant 5.000000e-01 : f32
    %101 = vector.broadcast %cst_50 : f32 to vector<16x128xf32>
    %102 = arith.mulf %101, %99 : vector<16x128xf32>
    %103 = math.exp %102 : vector<16x128xf32>
    %104 = arith.mulf %100, %103 : vector<16x128xf32>
    %c64_i32 = arith.constant 64 : i32
    %105 = tpu.dynamic_rotate %104 by %c64_i32 dim 1 : vector<16x128xf32>, i32 -> vector<16x128xf32>
    %106 = arith.addf %99, %105 : vector<16x128xf32>
    %107 = arith.truncf %106 : vector<16x128xf32> to vector<16x128xbf16>
    %c0_51 = arith.constant 0 : index
    %c0_52 = arith.constant 0 : index
    %108 = vector.load %arg16[%c0_51, %c0_52] : memref<128x128xbf16, #tpu.memory_space<vmem>>, vector<128x128xbf16>
    %cst_53 = arith.constant dense<0.000000e+00> : vector<16x128xf32>
    %109 = tpu.matmul %107, %108, %cst_53 {dimension_numbers = #tpu.dot_dimension_numbers<[1], [0], [0], [1], [0, 0, 1, 1], [], []>} : vector<16x128xbf16>, vector<128x128xbf16>, vector<16x128xf32> -> vector<16x128xf32>
    %c0_54 = arith.constant 0 : index
    %c0_55 = arith.constant 0 : index
    %110 = vector.load %arg17[%c0_54, %c0_55] : memref<1x128xf32, #tpu.memory_space<vmem>>, vector<1x128xf32>
    %111 = vector.broadcast %110 : vector<1x128xf32> to vector<16x128xf32>
    %112 = arith.addf %109, %111 : vector<16x128xf32>
    %c0_56 = arith.constant 0 : index
    %c0_57 = arith.constant 0 : index
    %113 = vector.load %arg18[%c0_56, %c0_57] : memref<1x128xf32, #tpu.memory_space<vmem>>, vector<1x128xf32>
    %c0_58 = arith.constant 0 : index
    %c0_59 = arith.constant 0 : index
    %114 = vector.load %arg19[%c0_58, %c0_59] : memref<1x128xf32, #tpu.memory_space<vmem>>, vector<1x128xf32>
    %cst_60 = arith.constant dense<0.000000e+00> : vector<16xf32>
    %115 = vector.multi_reduction <add>, %112, %cst_60 [1] : vector<16x128xf32> to vector<16xf32>
    %116 = vector.shape_cast %115 : vector<16xf32> to vector<16x1xf32>
    %117 = arith.mulf %112, %112 : vector<16x128xf32>
    %cst_61 = arith.constant dense<0.000000e+00> : vector<16xf32>
    %118 = vector.multi_reduction <add>, %117, %cst_61 [1] : vector<16x128xf32> to vector<16xf32>
    %119 = vector.shape_cast %118 : vector<16xf32> to vector<16x1xf32>
    %cst_62 = arith.constant 7.812500e-03 : f32
    %120 = vector.broadcast %cst_62 : f32 to vector<16x1xf32>
    %121 = arith.mulf %116, %120 : vector<16x1xf32>
    %cst_63 = arith.constant 7.812500e-03 : f32
    %122 = vector.broadcast %cst_63 : f32 to vector<16x1xf32>
    %123 = arith.mulf %119, %122 : vector<16x1xf32>
    %124 = arith.mulf %121, %121 : vector<16x1xf32>
    %125 = arith.subf %123, %124 : vector<16x1xf32>
    %126 = vector.broadcast %121 : vector<16x1xf32> to vector<16x128xf32>
    %127 = arith.subf %112, %126 : vector<16x128xf32>
    %cst_64 = arith.constant 9.99999974E-6 : f32
    %128 = vector.broadcast %cst_64 : f32 to vector<16x1xf32>
    %129 = arith.addf %125, %128 : vector<16x1xf32>
    %130 = math.rsqrt %129 : vector<16x1xf32>
    %131 = vector.broadcast %130 : vector<16x1xf32> to vector<16x128xf32>
    %132 = arith.mulf %127, %131 : vector<16x128xf32>
    %133 = vector.broadcast %113 : vector<1x128xf32> to vector<16x128xf32>
    %134 = arith.mulf %132, %133 : vector<16x128xf32>
    %135 = vector.broadcast %114 : vector<1x128xf32> to vector<16x128xf32>
    %136 = arith.addf %134, %135 : vector<16x128xf32>
    %cst_65 = arith.constant 0.000000e+00 : f32
    %137 = vector.broadcast %cst_65 : f32 to vector<16x128xf32>
    %138 = arith.cmpf ogt, %136, %137 : vector<16x128xf32>
    %cst_66 = arith.constant 2.000000e-01 : f32
    %139 = vector.broadcast %cst_66 : f32 to vector<16x128xf32>
    %140 = arith.mulf %139, %136 : vector<16x128xf32>
    %141 = arith.select %138, %136, %140 : vector<16x128xi1>, vector<16x128xf32>
    %142 = arith.truncf %141 : vector<16x128xf32> to vector<16x128xbf16>
    %c0_67 = arith.constant 0 : index
    %c0_68 = arith.constant 0 : index
    %143 = vector.load %arg20[%c0_67, %c0_68] : memref<128x128xbf16, #tpu.memory_space<vmem>>, vector<128x128xbf16>
    %cst_69 = arith.constant dense<0.000000e+00> : vector<16x128xf32>
    %144 = tpu.matmul %142, %143, %cst_69 {dimension_numbers = #tpu.dot_dimension_numbers<[1], [0], [0], [1], [0, 0, 1, 1], [], []>} : vector<16x128xbf16>, vector<128x128xbf16>, vector<16x128xf32> -> vector<16x128xf32>
    %c0_70 = arith.constant 0 : index
    %c0_71 = arith.constant 0 : index
    %145 = vector.load %arg21[%c0_70, %c0_71] : memref<1x128xf32, #tpu.memory_space<vmem>>, vector<1x128xf32>
    %146 = vector.broadcast %145 : vector<1x128xf32> to vector<16x128xf32>
    %147 = arith.addf %144, %146 : vector<16x128xf32>
    %c0_72 = arith.constant 0 : index
    %c0_73 = arith.constant 0 : index
    %148 = vector.load %arg22[%c0_72, %c0_73] : memref<1x128xf32, #tpu.memory_space<vmem>>, vector<1x128xf32>
    %c0_74 = arith.constant 0 : index
    %c0_75 = arith.constant 0 : index
    %149 = vector.load %arg23[%c0_74, %c0_75] : memref<1x128xf32, #tpu.memory_space<vmem>>, vector<1x128xf32>
    %cst_76 = arith.constant dense<0.000000e+00> : vector<16xf32>
    %150 = vector.multi_reduction <add>, %147, %cst_76 [1] : vector<16x128xf32> to vector<16xf32>
    %151 = vector.shape_cast %150 : vector<16xf32> to vector<16x1xf32>
    %152 = arith.mulf %147, %147 : vector<16x128xf32>
    %cst_77 = arith.constant dense<0.000000e+00> : vector<16xf32>
    %153 = vector.multi_reduction <add>, %152, %cst_77 [1] : vector<16x128xf32> to vector<16xf32>
    %154 = vector.shape_cast %153 : vector<16xf32> to vector<16x1xf32>
    %cst_78 = arith.constant 7.812500e-03 : f32
    %155 = vector.broadcast %cst_78 : f32 to vector<16x1xf32>
    %156 = arith.mulf %151, %155 : vector<16x1xf32>
    %cst_79 = arith.constant 7.812500e-03 : f32
    %157 = vector.broadcast %cst_79 : f32 to vector<16x1xf32>
    %158 = arith.mulf %154, %157 : vector<16x1xf32>
    %159 = arith.mulf %156, %156 : vector<16x1xf32>
    %160 = arith.subf %158, %159 : vector<16x1xf32>
    %161 = vector.broadcast %156 : vector<16x1xf32> to vector<16x128xf32>
    %162 = arith.subf %147, %161 : vector<16x128xf32>
    %cst_80 = arith.constant 9.99999974E-6 : f32
    %163 = vector.broadcast %cst_80 : f32 to vector<16x1xf32>
    %164 = arith.addf %160, %163 : vector<16x1xf32>
    %165 = math.rsqrt %164 : vector<16x1xf32>
    %166 = vector.broadcast %165 : vector<16x1xf32> to vector<16x128xf32>
    %167 = arith.mulf %162, %166 : vector<16x128xf32>
    %168 = vector.broadcast %148 : vector<1x128xf32> to vector<16x128xf32>
    %169 = arith.mulf %167, %168 : vector<16x128xf32>
    %170 = vector.broadcast %149 : vector<1x128xf32> to vector<16x128xf32>
    %171 = arith.addf %169, %170 : vector<16x128xf32>
    %cst_81 = arith.constant 0.000000e+00 : f32
    %172 = vector.broadcast %cst_81 : f32 to vector<16x128xf32>
    %173 = arith.cmpf ogt, %171, %172 : vector<16x128xf32>
    %cst_82 = arith.constant 2.000000e-01 : f32
    %174 = vector.broadcast %cst_82 : f32 to vector<16x128xf32>
    %175 = arith.mulf %174, %171 : vector<16x128xf32>
    %176 = arith.select %173, %171, %175 : vector<16x128xi1>, vector<16x128xf32>
    %177 = arith.addf %141, %176 : vector<16x128xf32>
    %178 = arith.truncf %177 : vector<16x128xf32> to vector<16x128xbf16>
    %c0_83 = arith.constant 0 : index
    %c0_84 = arith.constant 0 : index
    %179 = vector.load %arg24[%c0_83, %c0_84] : memref<128x128xbf16, #tpu.memory_space<vmem>>, vector<128x128xbf16>
    %cst_85 = arith.constant dense<0.000000e+00> : vector<16x128xf32>
    %180 = tpu.matmul %178, %179, %cst_85 {dimension_numbers = #tpu.dot_dimension_numbers<[1], [0], [0], [1], [0, 0, 1, 1], [], []>} : vector<16x128xbf16>, vector<128x128xbf16>, vector<16x128xf32> -> vector<16x128xf32>
    %c0_86 = arith.constant 0 : index
    %c0_87 = arith.constant 0 : index
    %181 = vector.load %arg25[%c0_86, %c0_87] : memref<1x128xf32, #tpu.memory_space<vmem>>, vector<1x128xf32>
    %182 = vector.broadcast %181 : vector<1x128xf32> to vector<16x128xf32>
    %183 = arith.addf %180, %182 : vector<16x128xf32>
    %cst_88 = arith.constant 0.000000e+00 : f32
    %184 = vector.broadcast %cst_88 : f32 to vector<16x128xf32>
    %185 = arith.cmpf ogt, %183, %184 : vector<16x128xf32>
    %cst_89 = arith.constant 2.000000e-01 : f32
    %186 = vector.broadcast %cst_89 : f32 to vector<16x128xf32>
    %187 = arith.mulf %186, %183 : vector<16x128xf32>
    %188 = arith.select %185, %183, %187 : vector<16x128xi1>, vector<16x128xf32>
    %189 = arith.truncf %188 : vector<16x128xf32> to vector<16x128xbf16>
    %c0_90 = arith.constant 0 : index
    %c0_91 = arith.constant 0 : index
    %190 = vector.load %arg26[%c0_90, %c0_91] : memref<128x128xbf16, #tpu.memory_space<vmem>>, vector<128x128xbf16>
    %cst_92 = arith.constant dense<0.000000e+00> : vector<16x128xf32>
    %191 = tpu.matmul %189, %190, %cst_92 {dimension_numbers = #tpu.dot_dimension_numbers<[1], [0], [0], [1], [0, 0, 1, 1], [], []>} : vector<16x128xbf16>, vector<128x128xbf16>, vector<16x128xf32> -> vector<16x128xf32>
    %c0_93 = arith.constant 0 : index
    %c0_94 = arith.constant 0 : index
    %192 = vector.load %arg27[%c0_93, %c0_94] : memref<1x128xf32, #tpu.memory_space<vmem>>, vector<1x128xf32>
    %193 = vector.broadcast %192 : vector<1x128xf32> to vector<16x128xf32>
    %194 = arith.addf %191, %193 : vector<16x128xf32>
    %195 = arith.negf %194 : vector<16x128xf32>
    %196 = math.exp %195 : vector<16x128xf32>
    %cst_95 = arith.constant 1.000000e+00 : f32
    %197 = vector.broadcast %cst_95 : f32 to vector<16x128xf32>
    %198 = arith.addf %197, %196 : vector<16x128xf32>
    %199 = arith.divf %197, %198 : vector<16x128xf32>
    %200 = arith.mulf %177, %199 : vector<16x128xf32>
    %201 = arith.truncf %200 : vector<16x128xf32> to vector<16x128xbf16>
    %c0_96 = arith.constant 0 : index
    %c0_97 = arith.constant 0 : index
    %202 = vector.load %arg28[%c0_96, %c0_97] : memref<128x128xbf16, #tpu.memory_space<vmem>>, vector<128x128xbf16>
    %cst_98 = arith.constant dense<0.000000e+00> : vector<16x128xf32>
    %203 = tpu.matmul %201, %202, %cst_98 {dimension_numbers = #tpu.dot_dimension_numbers<[1], [0], [0], [1], [0, 0, 1, 1], [], []>} : vector<16x128xbf16>, vector<128x128xbf16>, vector<16x128xf32> -> vector<16x128xf32>
    %c0_99 = arith.constant 0 : index
    %c0_100 = arith.constant 0 : index
    %204 = vector.load %arg29[%c0_99, %c0_100] : memref<1x128xf32, #tpu.memory_space<vmem>>, vector<1x128xf32>
    %205 = vector.broadcast %204 : vector<1x128xf32> to vector<16x128xf32>
    %206 = arith.addf %203, %205 : vector<16x128xf32>
    %207 = arith.truncf %206 : vector<16x128xf32> to vector<16x128xbf16>
    %c0_101 = arith.constant 0 : index
    %c0_102 = arith.constant 0 : index
    %208 = vector.load %arg30[%c0_101, %c0_102] : memref<16x128xbf16, #tpu.memory_space<vmem>>, vector<16x128xbf16>
    tpu.vector_store %arg30[%c0_101, %c0_102], %207 {strides = array<i32>} : memref<16x128xbf16, #tpu.memory_space<vmem>>, vector<16x128xbf16>,
    %c0_103 = arith.constant 0 : index
    %c0_104 = arith.constant 0 : index
    %209 = vector.load %arg31[%c0_103, %c0_104] : memref<16x128xf32, #tpu.memory_space<vmem>>, vector<16x128xf32>
    tpu.vector_store %arg31[%c0_103, %c0_104], %99 {strides = array<i32>} : memref<16x128xf32, #tpu.memory_space<vmem>>, vector<16x128xf32>,
    return
  }
  func.func @transform_0(%arg0: i32) -> (i32, i32) {
    %c0_i32 = arith.constant 0 : i32
    %c0_i32_0 = arith.constant 0 : i32
    return %arg0, %c0_i32 : i32, i32
  }
  func.func @transform_1(%arg0: i32) -> (i32, i32) {
    %c0_i32 = arith.constant 0 : i32
    %c0_i32_0 = arith.constant 0 : i32
    %c0_i32_1 = arith.constant 0 : i32
    return %c0_i32, %c0_i32_0 : i32, i32
  }
  func.func @transform_2(%arg0: i32) -> (i32, i32) {
    %c0_i32 = arith.constant 0 : i32
    %c0_i32_0 = arith.constant 0 : i32
    %c0_i32_1 = arith.constant 0 : i32
    return %c0_i32, %c0_i32_0 : i32, i32
  }
  func.func @transform_3(%arg0: i32) -> (i32, i32) {
    %c0_i32 = arith.constant 0 : i32
    %c0_i32_0 = arith.constant 0 : i32
    %c0_i32_1 = arith.constant 0 : i32
    return %c0_i32, %c0_i32_0 : i32, i32
  }
  func.func @transform_4(%arg0: i32) -> (i32, i32) {
    %c0_i32 = arith.constant 0 : i32
    %c0_i32_0 = arith.constant 0 : i32
    %c0_i32_1 = arith.constant 0 : i32
    return %c0_i32, %c0_i32_0 : i32, i32
  }
  func.func @transform_5(%arg0: i32) -> (i32, i32) {
    %c0_i32 = arith.constant 0 : i32
    %c0_i32_0 = arith.constant 0 : i32
    %c0_i32_1 = arith.constant 0 : i32
    return %c0_i32, %c0_i32_0 : i32, i32
  }
  func.func @transform_6(%arg0: i32) -> (i32, i32) {
    %c0_i32 = arith.constant 0 : i32
    %c0_i32_0 = arith.constant 0 : i32
    %c0_i32_1 = arith.constant 0 : i32
    return %c0_i32, %c0_i32_0 : i32, i32
  }
  func.func @transform_7(%arg0: i32) -> (i32, i32) {
    %c0_i32 = arith.constant 0 : i32
    %c0_i32_0 = arith.constant 0 : i32
    %c0_i32_1 = arith.constant 0 : i32
    return %c0_i32, %c0_i32_0 : i32, i32
  }
  func.func @transform_8(%arg0: i32) -> (i32, i32) {
    %c0_i32 = arith.constant 0 : i32
    %c0_i32_0 = arith.constant 0 : i32
    %c0_i32_1 = arith.constant 0 : i32
    return %c0_i32, %c0_i32_0 : i32, i32
  }
  func.func @transform_9(%arg0: i32) -> (i32, i32) {
    %c0_i32 = arith.constant 0 : i32
    %c0_i32_0 = arith.constant 0 : i32
    %c0_i32_1 = arith.constant 0 : i32
    return %c0_i32, %c0_i32_0 : i32, i32
  }
  func.func @transform_10(%arg0: i32) -> (i32, i32) {
    %c0_i32 = arith.constant 0 : i32
    %c0_i32_0 = arith.constant 0 : i32
    %c0_i32_1 = arith.constant 0 : i32
    return %c0_i32, %c0_i32_0 : i32, i32
  }
  func.func @transform_11(%arg0: i32) -> (i32, i32) {
    %c0_i32 = arith.constant 0 : i32
    %c0_i32_0 = arith.constant 0 : i32
    %c0_i32_1 = arith.constant 0 : i32
    return %c0_i32, %c0_i32_0 : i32, i32
  }
  func.func @transform_12(%arg0: i32) -> (i32, i32) {
    %c0_i32 = arith.constant 0 : i32
    %c0_i32_0 = arith.constant 0 : i32
    %c0_i32_1 = arith.constant 0 : i32
    return %c0_i32, %c0_i32_0 : i32, i32
  }
  func.func @transform_13(%arg0: i32) -> (i32, i32) {
    %c0_i32 = arith.constant 0 : i32
    %c0_i32_0 = arith.constant 0 : i32
    %c0_i32_1 = arith.constant 0 : i32
    return %c0_i32, %c0_i32_0 : i32, i32
  }
  func.func @transform_14(%arg0: i32) -> (i32, i32) {
    %c0_i32 = arith.constant 0 : i32
    %c0_i32_0 = arith.constant 0 : i32
    %c0_i32_1 = arith.constant 0 : i32
    return %c0_i32, %c0_i32_0 : i32, i32
  }
  func.func @transform_15(%arg0: i32) -> (i32, i32) {
    %c0_i32 = arith.constant 0 : i32
    %c0_i32_0 = arith.constant 0 : i32
    %c0_i32_1 = arith.constant 0 : i32
    return %c0_i32, %c0_i32_0 : i32, i32
  }
  func.func @transform_16(%arg0: i32) -> (i32, i32) {
    %c0_i32 = arith.constant 0 : i32
    %c0_i32_0 = arith.constant 0 : i32
    %c0_i32_1 = arith.constant 0 : i32
    return %c0_i32, %c0_i32_0 : i32, i32
  }
  func.func @transform_17(%arg0: i32) -> (i32, i32) {
    %c0_i32 = arith.constant 0 : i32
    %c0_i32_0 = arith.constant 0 : i32
    %c0_i32_1 = arith.constant 0 : i32
    return %c0_i32, %c0_i32_0 : i32, i32
  }
  func.func @transform_18(%arg0: i32) -> (i32, i32) {
    %c0_i32 = arith.constant 0 : i32
    %c0_i32_0 = arith.constant 0 : i32
    %c0_i32_1 = arith.constant 0 : i32
    return %c0_i32, %c0_i32_0 : i32, i32
  }
  func.func @transform_19(%arg0: i32) -> (i32, i32) {
    %c0_i32 = arith.constant 0 : i32
    %c0_i32_0 = arith.constant 0 : i32
    %c0_i32_1 = arith.constant 0 : i32
    return %c0_i32, %c0_i32_0 : i32, i32
  }
  func.func @transform_20(%arg0: i32) -> (i32, i32) {
    %c0_i32 = arith.constant 0 : i32
    %c0_i32_0 = arith.constant 0 : i32
    %c0_i32_1 = arith.constant 0 : i32
    return %c0_i32, %c0_i32_0 : i32, i32
  }
  func.func @transform_21(%arg0: i32) -> (i32, i32) {
    %c0_i32 = arith.constant 0 : i32
    %c0_i32_0 = arith.constant 0 : i32
    %c0_i32_1 = arith.constant 0 : i32
    return %c0_i32, %c0_i32_0 : i32, i32
  }
  func.func @transform_22(%arg0: i32) -> (i32, i32) {
    %c0_i32 = arith.constant 0 : i32
    %c0_i32_0 = arith.constant 0 : i32
    %c0_i32_1 = arith.constant 0 : i32
    return %c0_i32, %c0_i32_0 : i32, i32
  }
  func.func @transform_23(%arg0: i32) -> (i32, i32) {
    %c0_i32 = arith.constant 0 : i32
    %c0_i32_0 = arith.constant 0 : i32
    %c0_i32_1 = arith.constant 0 : i32
    return %c0_i32, %c0_i32_0 : i32, i32
  }
  func.func @transform_24(%arg0: i32) -> (i32, i32) {
    %c0_i32 = arith.constant 0 : i32
    %c0_i32_0 = arith.constant 0 : i32
    %c0_i32_1 = arith.constant 0 : i32
    return %c0_i32, %c0_i32_0 : i32, i32
  }
  func.func @transform_25(%arg0: i32) -> (i32, i32) {
    %c0_i32 = arith.constant 0 : i32
    %c0_i32_0 = arith.constant 0 : i32
    %c0_i32_1 = arith.constant 0 : i32
    return %c0_i32, %c0_i32_0 : i32, i32
  }
  func.func @transform_26(%arg0: i32) -> (i32, i32) {
    %c0_i32 = arith.constant 0 : i32
    %c0_i32_0 = arith.constant 0 : i32
    %c0_i32_1 = arith.constant 0 : i32
    return %c0_i32, %c0_i32_0 : i32, i32
  }
  func.func @transform_27(%arg0: i32) -> (i32, i32) {
    %c0_i32 = arith.constant 0 : i32
    %c0_i32_0 = arith.constant 0 : i32
    %c0_i32_1 = arith.constant 0 : i32
    return %c0_i32, %c0_i32_0 : i32, i32
  }
  func.func @transform_28(%arg0: i32) -> (i32, i32) {
    %c0_i32 = arith.constant 0 : i32
    %c0_i32_0 = arith.constant 0 : i32
    %c0_i32_1 = arith.constant 0 : i32
    return %c0_i32, %c0_i32_0 : i32, i32
  }
  func.func @transform_29(%arg0: i32) -> (i32, i32) {
    %c0_i32 = arith.constant 0 : i32
    %c0_i32_0 = arith.constant 0 : i32
    return %arg0, %c0_i32 : i32, i32
  }
  func.func @transform_30(%arg0: i32) -> (i32, i32) {
    %c0_i32 = arith.constant 0 : i32
    %c0_i32_0 = arith.constant 0 : i32
    return %arg0, %c0_i32 : i32, i32
  }
}

</mosaic_0001>

<bundles_post_ra>
// kernel: forward.1
= control target key start
LH: loop header
LB: loop body
LE: loop exit
PB: predicated region body
PF: predicated region fallthrough
CT: control target
= control target key end

     0   :  { %s2685_s6 = smov 1   ;;  %s2686_s10 = smov 2   ;;  %s3172_s0 = inlined_call_operand.smem [shape: u32[31], index: -1, kind: input, shape index: {}] }
   0x1   :  { %s2742_s5 = sld [smem:[%s3172_s0]]   ;;  %s2687_s14 = smov 3  }
   0x2   :  { %s2747_s9 = sld [smem:[%s3172_s0 + %s2685_s6]]   ;;  %s2688_s18 = smov 4  }
   0x3   :  { %s2752_s13 = sld [smem:[%s3172_s0 + %s2686_s10]]   ;;  %s2689_s22 = smov 5  }
   0x4   :  { %s2757_s17 = sld [smem:[%s3172_s0 + %s2687_s14]]   ;;  %s2690_s26 = smov 6  }
   0x5   :  { %s2762_s21 = sld [smem:[%s3172_s0 + %s2688_s18]]   ;;  %s2691_s30 = smov 7  }
   0x6   :  { %s2767_s25 = sld [smem:[%s3172_s0 + %s2689_s22]]   ;;  %s2692_s4 = smov 8  }
   0x7   :  { %3175 = sst [smem:[#allocation33_spill]] %s2742_s5  ;;  %s2693_s10 = smov 9  }
   0x8   :  { %3176 = sst [smem:[#allocation34_spill]] %s2747_s9  ;;  %s2694_s15 = smov 10  }
   0x9   :  { %3177 = sst [smem:[#allocation35_spill]] %s2752_s13  ;;  %s2695_s20 = smov 11  }
   0xa   :  { %s2772_s29 = sld [smem:[%s3172_s0 + %s2690_s26]]   ;;  %s2696_s26 = smov 12  }
   0xb   :  { %s2777_s3 = sld [smem:[%s3172_s0 + %s2691_s30]]   ;;  %s2697_s1 = smov 13  }
   0xc   :  { %s2782_s8 = sld [smem:[%s3172_s0 + %s2692_s4]]   ;;  %s2698_s7 = smov 14  }
   0xd   :  { %s2787_s14 = sld [smem:[%s3172_s0 + %s2693_s10]]   ;;  %s2700_s22 = smov 16  }
   0xe   :  { %s2792_s19 = sld [smem:[%s3172_s0 + %s2694_s15]]   ;;  %s2699_s15 = smov 15  }
   0xf   :  { %s2797_s24 = sld [smem:[%s3172_s0 + %s2695_s20]]   ;;  %s2701_s28 = smov 17  }
  0x10   :  { %s2802_s30 = sld [smem:[%s3172_s0 + %s2696_s26]]  }
  0x11   :  { %s2807_s6 = sld [smem:[%s3172_s0 + %s2697_s1]]  }
  0x12   :  { %s2812_s12 = sld [smem:[%s3172_s0 + %s2698_s7]]   ;;  %s2702_s7 = smov 18  }
  0x13   :  { %s2817_s20 = sld [smem:[%s3172_s0 + %s2699_s15]]   ;;  %s2703_s15 = smov 19  }
  0x14   :  { %s2822_s27 = sld [smem:[%s3172_s0 + %s2700_s22]]   ;;  %s2704_s22 = smov 20  }
  0x15   :  { %s2827_s4 = sld [smem:[%s3172_s0 + %s2701_s28]]   ;;  %s2705_s28 = smov 21  }
  0x17   :  { %3178 = sst [smem:[#allocation36_spill]] %s2807_s6 }
  0x18   :  { %3179 = sst [smem:[#allocation37_spill]] %s2812_s12 }
  0x19   :  { %s2832_s12 = sld [smem:[%s3172_s0 + %s2702_s7]]   ;;  %s2706_s7 = smov 22  }
  0x1a   :  { %3180 = sst [smem:[#allocation38_spill]] %s2822_s27 }
  0x1b   :  { %3181 = sst [smem:[#allocation39_spill]] %s2827_s4 }
  0x1c   :  { %s2837_s6 = sld [smem:[%s3172_s0 + %s2703_s15]]   ;;  %s2707_s15 = smov 23  }
  0x1d   :  { %s2842_s27 = sld [smem:[%s3172_s0 + %s2704_s22]]   ;;  %s2708_s22 = smov 24  }
  0x1e   :  { %s2847_s4 = sld [smem:[%s3172_s0 + %s2705_s28]]   ;;  %s2709_s28 = smov 25  }
  0x1f   :  { %3182 = sst [smem:[#allocation40_spill]] %s2832_s12 }
  0x20   :  { %s2852_s12 = sld [smem:[%s3172_s0 + %s2706_s7]]   ;;  %s2710_s7 = smov 26  }
  0x21   :  { %s2857_s13 = sld [smem:[%s3172_s0 + %s2707_s15]]   ;;  %s2711_s15 = smov 27  }
  0x22   :  { %s2877_s5 = sld [smem:[%s3172_s0 + %s2711_s15]]  }
  0x23   :  { %3183 = sst [smem:[#allocation41_spill]] %s2842_s27 }
  0x24   :  { %3184 = sst [smem:[#allocation42_spill]] %s2847_s4 }
  0x25   :  { %s2862_s27 = sld [smem:[%s3172_s0 + %s2708_s22]]   ;;  %s2712_s22 = smov 28  }
  0x26   :  { %3185 = sst [smem:[#allocation43_spill]] %s2852_s12 }
  0x27   :  { %s2867_s4 = sld [smem:[%s3172_s0 + %s2709_s28]]   ;;  %s2713_s28 = smov 29  }
  0x28   :  { %s2872_s12 = sld [smem:[%s3172_s0 + %s2710_s7]]   ;;  %s2714_s7 = smov 30  }
  0x29   :  { %s2887_s9 = sld [smem:[%s3172_s0 + %s2713_s28]]  }
  0x2b   :  { %3186 = sst [smem:[#allocation44_spill]] %s2862_s27 }
  0x2c   :  { %s2882_s27 = sld [smem:[%s3172_s0 + %s2712_s22]]  }
  0x2e   :  { %3187 = sst [smem:[#allocation45_spill]] %s2872_s12 }
  0x2f   :  { %s2892_s12 = sld [smem:[%s3172_s0 + %s2714_s7]]  }
  0x30   :  { %67 = vsyncpa [#allocation3], 0 }
  0x31   :  { %68 = vsyncpa [#allocation5], 0 }
  0x32   :  { %69 = vsyncpa [#allocation8], 0 }
  0x33   :  { %70 = vsyncpa [#allocation11], 0 }
  0x34   :  { %71 = vsyncpa [#allocation14], 0 }
  0x35   :  { %72 = vsyncpa [#allocation17], 0 }
  0x36   :  { %73 = vsyncpa [#allocation20], 0 }
  0x37   :  { %74 = vsyncpa [#allocation23], 0  ;;  %s2715_s15 = smov [#allocation4]   ;;  %s2716_s18 = smov [#allocation7]  }
  0x38   :  { %s97_s16 = sshll.u32 %s2715_s15, 4  ;;  %s119_s22 = sshll.u32 %s2716_s18, 4  ;;  %s98_s16 = int_to_ptr.vmem [resolvable:$true] %s97_s16  ;;  %s120_s22 = int_to_ptr.vmem [resolvable:$true] %s119_s22 }
  0x39   :  { %s2339_s23 = scalar_lea.hbm %s2762_s21, 16 }
  0x3a   :  { %p2340_p0 = scmp.ne.s32.totalorder %s2762_s21, %s2339_s23  ;;  %p2343_p1 = scmp.lt.u32.totalorder %s2339_s23, %s2762_s21 }
  0x3c   :  { %p2345_p2 = pnand %p2343_p1, %p2340_p0 }
  0x3e   :  { %2348 = shalt.err (!%p2345_p2)
}
  0x3f   :  { %s2349_s0 = scalar_lea.vmem %s98_s16, 16  ;;  %s2353_s26 = scalar_lea.vmem %s98_s16, 32 }
  0x40   :  { %p2350_p3 = scmp.ne.s32.totalorder %s98_s16, %s2349_s0  ;;  %p2354_p4 = scmp.lt.s32.totalorder %s98_s16, %s98_s16 }
  0x41   :  { %p2355_p5 = scmp.lt.s32.totalorder %s2353_s26, %s2349_s0 }
  0x43   :  { %p2356_p6 = por %p2355_p5, %p2354_p4 }
  0x45   :  { %p2357_p7 = pnand %p2356_p6, %p2350_p3 }
  0x47   :  { %2360 = shalt.err (!%p2357_p7)
}
  0x48   :  { %100 = dma.hbm_to_vmem [thread:$0]  %s2762_s21, 16, %s98_s16, [#allocation5]  }
  0x49   :  { %s2361_s28 = scalar_lea.hbm %s2772_s29, 16 }
  0x4a   :  { %p2362_p8 = scmp.ne.s32.totalorder %s2772_s29, %s2361_s28  ;;  %p2365_p9 = scmp.lt.u32.totalorder %s2361_s28, %s2772_s29 }
  0x4c   :  { %p2367_p10 = pnand %p2365_p9, %p2362_p8 }
  0x4e   :  { %2370 = shalt.err (!%p2367_p10)
}
  0x4f   :  { %s2371_s1 = scalar_lea.vmem %s120_s22, 16  ;;  %s2375_s2 = scalar_lea.vmem %s120_s22, 32 }
  0x50   :  { %p2372_p11 = scmp.ne.s32.totalorder %s120_s22, %s2371_s1  ;;  %p2376_p12 = scmp.lt.s32.totalorder %s120_s22, %s120_s22 }
  0x51   :  { %p2377_p13 = scmp.lt.s32.totalorder %s2375_s2, %s2371_s1 }
  0x53   :  { %p2378_p0 = por %p2377_p13, %p2376_p12 }
  0x55   :  { %p2379_p1 = pnand %p2378_p0, %p2372_p11 }
  0x57   :  { %2382 = shalt.err (!%p2379_p1)
}
  0x58   :  { %122 = dma.hbm_to_vmem [thread:$0]  %s2772_s29, 16, %s120_s22, [#allocation8]  }
  0x59   :  { %s2717_s7 = smov [#allocation10]   ;;  %s2718_s10 = smov [#allocation13]  }
  0x5a   :  { %s139_s21 = sshll.u32 %s2717_s7, 4  ;;  %s161_s11 = sshll.u32 %s2718_s10, 4  ;;  %s140_s21 = int_to_ptr.vmem [resolvable:$true] %s139_s21  ;;  %s162_s11 = int_to_ptr.vmem [resolvable:$true] %s161_s11 }
  0x5b   :  { %s2383_s15 = scalar_lea.hbm %s2782_s8, 16 }
  0x5c   :  { %p2384_p2 = scmp.ne.s32.totalorder %s2782_s8, %s2383_s15  ;;  %p2387_p3 = scmp.lt.u32.totalorder %s2383_s15, %s2782_s8 }
  0x5e   :  { %p2389_p4 = pnand %p2387_p3, %p2384_p2 }
  0x60   :  { %2392 = shalt.err (!%p2389_p4)
}
  0x61   :  { %s2393_s16 = scalar_lea.vmem %s140_s21, 16  ;;  %s2397_s18 = scalar_lea.vmem %s140_s21, 32 }
  0x62   :  { %p2394_p5 = scmp.ne.s32.totalorder %s140_s21, %s2393_s16  ;;  %p2398_p6 = scmp.lt.s32.totalorder %s140_s21, %s140_s21 }
  0x63   :  { %p2399_p7 = scmp.lt.s32.totalorder %s2397_s18, %s2393_s16 }
  0x65   :  { %p2400_p8 = por %p2399_p7, %p2398_p6 }
  0x67   :  { %p2401_p9 = pnand %p2400_p8, %p2394_p5 }
  0x69   :  { %2404 = shalt.err (!%p2401_p9)
}
  0x6a   :  { %142 = dma.hbm_to_vmem [thread:$0]  %s2782_s8, 16, %s140_s21, [#allocation11]  }
  0x6b   :  { %s2405_s29 = scalar_lea.hbm %s2792_s19, 16 }
  0x6c   :  { %p2406_p10 = scmp.ne.s32.totalorder %s2792_s19, %s2405_s29  ;;  %p2409_p11 = scmp.lt.u32.totalorder %s2405_s29, %s2792_s19 }
  0x6e   :  { %p2411_p12 = pnand %p2409_p11, %p2406_p10 }
  0x70   :  { %2414 = shalt.err (!%p2411_p12)
}
  0x71   :  { %s2415_s22 = scalar_lea.vmem %s162_s11, 16  ;;  %s2419_s23 = scalar_lea.vmem %s162_s11, 32 }
  0x72   :  { %p2416_p13 = scmp.ne.s32.totalorder %s162_s11, %s2415_s22  ;;  %p2420_p0 = scmp.lt.s32.totalorder %s162_s11, %s162_s11 }
  0x73   :  { %p2421_p1 = scmp.lt.s32.totalorder %s2419_s23, %s2415_s22 }
  0x75   :  { %p2422_p2 = por %p2421_p1, %p2420_p0 }
  0x77   :  { %p2423_p3 = pnand %p2422_p2, %p2416_p13 }
  0x79   :  { %2426 = shalt.err (!%p2423_p3)
}
  0x7a   :  { %164 = dma.hbm_to_vmem [thread:$0]  %s2792_s19, 16, %s162_s11, [#allocation14]  }
  0x7b   :  { %s2719_s0 = smov [#allocation16]   ;;  %s2427_s26 = scalar_lea.hbm %s2802_s30, 16 }
  0x7c   :  { %s183_s8 = sshll.u32 %s2719_s0, 4  ;;  %p2428_p4 = scmp.ne.s32.totalorder %s2802_s30, %s2427_s26  ;;  %s184_s8 = int_to_ptr.vmem [resolvable:$true] %s183_s8 }
  0x7d   :  { %p2431_p5 = scmp.lt.u32.totalorder %s2427_s26, %s2802_s30 }
  0x7f   :  { %p2433_p6 = pnand %p2431_p5, %p2428_p4 }
  0x81   :  { %2436 = shalt.err (!%p2433_p6)
}
  0x82   :  { %s2437_s28 = scalar_lea.vmem %s184_s8, 16  ;;  %s2441_s1 = scalar_lea.vmem %s184_s8, 32 }
  0x83   :  { %p2438_p7 = scmp.ne.s32.totalorder %s184_s8, %s2437_s28  ;;  %p2442_p8 = scmp.lt.s32.totalorder %s184_s8, %s184_s8 }
  0x84   :  { %p2443_p9 = scmp.lt.s32.totalorder %s2441_s1, %s2437_s28 }
  0x86   :  { %p2444_p10 = por %p2443_p9, %p2442_p8 }
  0x88   :  { %p2445_p11 = pnand %p2444_p10, %p2438_p7 }
  0x8a   :  { %2448 = shalt.err (!%p2445_p11)
}
  0x8b   :  { %186 = dma.hbm_to_vmem [thread:$0]  %s2802_s30, 16, %s184_s8, [#allocation17]  }
  0x8c   :  { %s2720_s19 = smov [#allocation19]   ;;  %s2721_s7 = smov [#allocation22]  }
  0x8d   :  { %s214_s2 = sshll.u32 %s2720_s19, 4  ;;  %s246_s21 = sshll.u32 %s2721_s7, 4  ;;  %s215_s2 = int_to_ptr.vmem [resolvable:$true] %s214_s2  ;;  %s247_s21 = int_to_ptr.vmem [resolvable:$true] %s246_s21 }
  0x8e   :  { %s2449_s10 = scalar_lea.hbm %s2837_s6, 1024 }
  0x8f   :  { %p2450_p12 = scmp.ne.s32.totalorder %s2837_s6, %s2449_s10  ;;  %p2453_p13 = scmp.lt.u32.totalorder %s2449_s10, %s2837_s6 }
  0x91   :  { %p2455_p0 = pnand %p2453_p13, %p2450_p12 }
  0x93   :  { %2458 = shalt.err (!%p2455_p0)
}
  0x94   :  { %s2459_s11 = scalar_lea.vmem %s215_s2, 1024  ;;  %p2464_p2 = scmp.lt.s32.totalorder %s215_s2, %s215_s2 }
  0x95   :  { %p2460_p1 = scmp.ne.s32.totalorder %s215_s2, %s2459_s11  ;;  %p2465_p3 = scmp.lt.s32.totalorder %s2459_s11, %s2459_s11 }
  0x97   :  { %p2466_p4 = por %p2465_p3, %p2464_p2 }
  0x99   :  { %p2467_p5 = pnand %p2466_p4, %p2460_p1 }
  0x9b   :  { %2470 = shalt.err (!%p2467_p5)
}
  0x9c   :  { %s2722_s15 = smov 64   ;;  %s2723_s30 = smov 4  }
  0x9d   :  { %220 = dma.hbm_to_vmem [thread:$0]  %s2837_s6, 1024, %s215_s2, [#allocation20], %s2722_s15, %s2722_s15, %s2723_s30  }
  0x9e   :  { %s2471_s16 = scalar_lea.hbm %s2867_s4, 1024 }
  0x9f   :  { %p2472_p6 = scmp.ne.s32.totalorder %s2867_s4, %s2471_s16  ;;  %p2475_p7 = scmp.lt.u32.totalorder %s2471_s16, %s2867_s4 }
  0xa1   :  { %p2477_p8 = pnand %p2475_p7, %p2472_p6 }
  0xa3   :  { %2480 = shalt.err (!%p2477_p8)
}
  0xa4   :  { %s2481_s18 = scalar_lea.vmem %s247_s21, 1024  ;;  %p2486_p10 = scmp.lt.s32.totalorder %s247_s21, %s247_s21 }
  0xa5   :  { %p2482_p9 = scmp.ne.s32.totalorder %s247_s21, %s2481_s18  ;;  %p2487_p11 = scmp.lt.s32.totalorder %s2481_s18, %s2481_s18 }
  0xa7   :  { %p2488_p12 = por %p2487_p11, %p2486_p10 }
  0xa9   :  { %p2489_p13 = pnand %p2488_p12, %p2482_p9 }
  0xab   :  { %2492 = shalt.err (!%p2489_p13)
}
  0xac   :  { %252 = dma.hbm_to_vmem [thread:$0]  %s2867_s4, 1024, %s247_s21, [#allocation23], %s2722_s15, %s2722_s15, %s2723_s30  }
  0xad   :  { %s2724_s6 = smov [#allocation2]   ;;  %s2725_s22 = smov [#allocation6]  }
  0xae   :  { %s87_s29 = sshll.u32 %s2724_s6, 4  ;;  %s106_s23 = sshll.u32 %s2725_s22, 4  ;;  %s88_s29 = int_to_ptr.vmem [resolvable:$true] %s87_s29  ;;  %s107_s23 = int_to_ptr.vmem [resolvable:$true] %s106_s23 }
  0xaf   :  { %s2493_s0 = scalar_lea.hbm %s2757_s17, 16 }
  0xb0   :  { %p2494_p0 = scmp.ne.s32.totalorder %s2757_s17, %s2493_s0  ;;  %p2497_p1 = scmp.lt.u32.totalorder %s2493_s0, %s2757_s17 }
  0xb2   :  { %p2499_p2 = pnand %p2497_p1, %p2494_p0 }
  0xb4   :  { %2502 = shalt.err (!%p2499_p2)
}
  0xb5   :  { %s2503_s8 = scalar_lea.vmem %s88_s29, 16  ;;  %s2507_s26 = scalar_lea.vmem %s88_s29, 32 }
  0xb6   :  { %p2504_p3 = scmp.ne.s32.totalorder %s88_s29, %s2503_s8  ;;  %p2508_p4 = scmp.lt.s32.totalorder %s88_s29, %s88_s29 }
  0xb7   :  { %p2509_p5 = scmp.lt.s32.totalorder %s2507_s26, %s2503_s8 }
  0xb9   :  { %p2510_p6 = por %p2509_p5, %p2508_p4 }
  0xbb   :  { %p2511_p7 = pnand %p2510_p6, %p2504_p3 }
  0xbd   :  { %2514 = shalt.err (!%p2511_p7)
}
  0xbe   :  { %90 = dma.hbm_to_vmem [thread:$0]  %s2757_s17, 16, %s88_s29, [#allocation3]  }
  0xbf   :  { %s2515_s4 = scalar_lea.hbm %s2767_s25, 1024 }
  0xc0   :  { %p2516_p8 = scmp.ne.s32.totalorder %s2767_s25, %s2515_s4  ;;  %p2519_p9 = scmp.lt.u32.totalorder %s2515_s4, %s2767_s25 }
  0xc2   :  { %p2521_p10 = pnand %p2519_p9, %p2516_p8 }
  0xc4   :  { %2524 = shalt.err (!%p2521_p10)
}
  0xc5   :  { %s2525_s28 = scalar_lea.vmem %s107_s23, 1024  ;;  %p2530_p12 = scmp.lt.s32.totalorder %s107_s23, %s107_s23 }
  0xc6   :  { %p2526_p11 = scmp.ne.s32.totalorder %s107_s23, %s2525_s28  ;;  %p2531_p13 = scmp.lt.s32.totalorder %s2525_s28, %s2525_s28 }
  0xc8   :  { %p2532_p0 = por %p2531_p13, %p2530_p12 }
  0xca   :  { %p2533_p1 = pnand %p2532_p0, %p2526_p11 }
  0xcc   :  { %2536 = shalt.err (!%p2533_p1)
}
  0xcd   :  { %112 = dma.hbm_to_vmem [thread:$0]  %s2767_s25, 1024, %s107_s23, [#allocation5], %s2722_s15, %s2722_s15, %s2723_s30  }
  0xce   :  { %s2726_s17 = smov [#allocation9]   ;;  %s2727_s19 = smov [#allocation12]  }
  0xcf   :  { %s129_s1 = sshll.u32 %s2726_s17, 4  ;;  %s148_s2 = sshll.u32 %s2727_s19, 4  ;;  %s130_s1 = int_to_ptr.vmem [resolvable:$true] %s129_s1  ;;  %s149_s2 = int_to_ptr.vmem [resolvable:$true] %s148_s2 }
  0xd0   :  { %s2537_s7 = scalar_lea.hbm %s2777_s3, 16 }
  0xd1   :  { %p2538_p2 = scmp.ne.s32.totalorder %s2777_s3, %s2537_s7  ;;  %p2541_p3 = scmp.lt.u32.totalorder %s2537_s7, %s2777_s3 }
  0xd3   :  { %p2543_p4 = pnand %p2541_p3, %p2538_p2 }
  0xd5   :  { %2546 = shalt.err (!%p2543_p4)
}
  0xd6   :  { %s2547_s21 = scalar_lea.vmem %s130_s1, 16  ;;  %s2551_s10 = scalar_lea.vmem %s130_s1, 32 }
  0xd7   :  { %p2548_p5 = scmp.ne.s32.totalorder %s130_s1, %s2547_s21  ;;  %p2552_p6 = scmp.lt.s32.totalorder %s130_s1, %s130_s1 }
  0xd8   :  { %p2553_p7 = scmp.lt.s32.totalorder %s2551_s10, %s2547_s21 }
  0xda   :  { %p2554_p8 = por %p2553_p7, %p2552_p6 }
  0xdc   :  { %p2555_p9 = pnand %p2554_p8, %p2548_p5 }
  0xde   :  { %2558 = shalt.err (!%p2555_p9)
}
  0xdf   :  { %132 = dma.hbm_to_vmem [thread:$0]  %s2777_s3, 16, %s130_s1, [#allocation8]  }
  0xe0   :  { %s2559_s25 = scalar_lea.hbm %s2787_s14, 1024 }
  0xe1   :  { %p2560_p10 = scmp.ne.s32.totalorder %s2787_s14, %s2559_s25  ;;  %p2563_p11 = scmp.lt.u32.totalorder %s2559_s25, %s2787_s14 }
  0xe3   :  { %p2565_p12 = pnand %p2563_p11, %p2560_p10 }
  0xe5   :  { %2568 = shalt.err (!%p2565_p12)
}
  0xe6   :  { %s2569_s11 = scalar_lea.vmem %s149_s2, 1024  ;;  %p2574_p0 = scmp.lt.s32.totalorder %s149_s2, %s149_s2 }
  0xe7   :  { %p2570_p13 = scmp.ne.s32.totalorder %s149_s2, %s2569_s11  ;;  %p2575_p1 = scmp.lt.s32.totalorder %s2569_s11, %s2569_s11 }
  0xe9   :  { %p2576_p2 = por %p2575_p1, %p2574_p0 }
  0xeb   :  { %p2577_p3 = pnand %p2576_p2, %p2570_p13 }
  0xed   :  { %2580 = shalt.err (!%p2577_p3)
}
  0xee   :  { %154 = dma.hbm_to_vmem [thread:$0]  %s2787_s14, 1024, %s149_s2, [#allocation11], %s2722_s15, %s2722_s15, %s2723_s30  }
  0xef   :  { %s2728_s3 = smov [#allocation15]   ;;  %s2729_s18 = smov [#allocation18]  }
  0xf0   :  { %s170_s16 = sshll.u32 %s2728_s3, 4  ;;  %s196_s6 = sshll.u32 %s2729_s18, 4  ;;  %s171_s16 = int_to_ptr.vmem [resolvable:$true] %s170_s16  ;;  %s197_s6 = int_to_ptr.vmem [resolvable:$true] %s196_s6 }
  0xf1   :  { %s2581_s29 = scalar_lea.hbm %s2797_s24, 1024 }
  0xf2   :  { %p2582_p4 = scmp.ne.s32.totalorder %s2797_s24, %s2581_s29  ;;  %p2585_p5 = scmp.lt.u32.totalorder %s2581_s29, %s2797_s24 }
  0xf4   :  { %p2587_p6 = pnand %p2585_p5, %p2582_p4 }
  0xf6   :  { %2590 = shalt.err (!%p2587_p6)
}
  0xf7   :  { %s2591_s22 = scalar_lea.vmem %s171_s16, 1024  ;;  %p2596_p8 = scmp.lt.s32.totalorder %s171_s16, %s171_s16 }
  0xf8   :  { %p2592_p7 = scmp.ne.s32.totalorder %s171_s16, %s2591_s22  ;;  %p2597_p9 = scmp.lt.s32.totalorder %s2591_s22, %s2591_s22 }
  0xfa   :  { %p2598_p10 = por %p2597_p9, %p2596_p8 }
  0xfc   :  { %p2599_p11 = pnand %p2598_p10, %p2592_p7 }
  0xfe   :  { %2602 = shalt.err (!%p2599_p11)
}
  0xff   :  { %176 = dma.hbm_to_vmem [thread:$0]  %s2797_s24, 1024, %s171_s16, [#allocation14], %s2722_s15, %s2722_s15, %s2723_s30  }
 0x100   :  { %s2603_s14 = scalar_lea.hbm %s2817_s20, 1024 }
 0x101   :  { %p2604_p12 = scmp.ne.s32.totalorder %s2817_s20, %s2603_s14  ;;  %p2607_p13 = scmp.lt.u32.totalorder %s2603_s14, %s2817_s20 }
 0x103   :  { %p2609_p0 = pnand %p2607_p13, %p2604_p12 }
 0x105   :  { %2612 = shalt.err (!%p2609_p0)
}
 0x106   :  { %s2613_s23 = scalar_lea.vmem %s197_s6, 1024  ;;  %p2618_p2 = scmp.lt.s32.totalorder %s197_s6, %s197_s6 }
 0x107   :  { %p2614_p1 = scmp.ne.s32.totalorder %s197_s6, %s2613_s23  ;;  %p2619_p3 = scmp.lt.s32.totalorder %s2613_s23, %s2613_s23 }
 0x109   :  { %p2620_p4 = por %p2619_p3, %p2618_p2 }
 0x10b   :  { %p2621_p5 = pnand %p2620_p4, %p2614_p1 }
 0x10d   :  { %2624 = shalt.err (!%p2621_p5)
}
 0x10e   :  { %202 = dma.hbm_to_vmem [thread:$0]  %s2817_s20, 1024, %s197_s6, [#allocation17], %s2722_s15, %s2722_s15, %s2723_s30  }
 0x10f   :  { %s2730_s24 = smov [#allocation21]   ;;  %s2731_s8 = smov [#allocation24]  }
 0x110   :  { %s232_s0 = sshll.u32 %s2730_s24, 4  ;;  %s260_s26 = sshll.u32 %s2731_s8, 4  ;;  %s233_s0 = int_to_ptr.vmem [resolvable:$true] %s232_s0  ;;  %s261_s26 = int_to_ptr.vmem [resolvable:$true] %s260_s26 }
 0x111   :  { %s2625_s4 = scalar_lea.hbm %s2857_s13, 1024 }
 0x112   :  { %p2626_p6 = scmp.ne.s32.totalorder %s2857_s13, %s2625_s4  ;;  %p2629_p7 = scmp.lt.u32.totalorder %s2625_s4, %s2857_s13 }
 0x114   :  { %p2631_p8 = pnand %p2629_p7, %p2626_p6 }
 0x116   :  { %2634 = shalt.err (!%p2631_p8)
}
 0x117   :  { %s2635_s28 = scalar_lea.vmem %s233_s0, 1024  ;;  %p2640_p10 = scmp.lt.s32.totalorder %s233_s0, %s233_s0 }
 0x118   :  { %p2636_p9 = scmp.ne.s32.totalorder %s233_s0, %s2635_s28  ;;  %p2641_p11 = scmp.lt.s32.totalorder %s2635_s28, %s2635_s28 }
 0x11a   :  { %p2642_p12 = por %p2641_p11, %p2640_p10 }
 0x11c   :  { %p2643_p13 = pnand %p2642_p12, %p2636_p9 }
 0x11e   :  { %2646 = shalt.err (!%p2643_p13)
}
 0x11f   :  { %238 = dma.hbm_to_vmem [thread:$0]  %s2857_s13, 1024, %s233_s0, [#allocation20], %s2722_s15, %s2722_s15, %s2723_s30  }
 0x120   :  { %s2647_s20 = scalar_lea.hbm %s2877_s5, 1024 }
 0x121   :  { %p2648_p0 = scmp.ne.s32.totalorder %s2877_s5, %s2647_s20  ;;  %p2651_p1 = scmp.lt.u32.totalorder %s2647_s20, %s2877_s5 }
 0x123   :  { %p2653_p2 = pnand %p2651_p1, %p2648_p0 }
 0x125   :  { %2656 = shalt.err (!%p2653_p2)
}
 0x126   :  { %s2657_s17 = scalar_lea.vmem %s261_s26, 1024  ;;  %p2662_p4 = scmp.lt.s32.totalorder %s261_s26, %s261_s26 }
 0x127   :  { %p2658_p3 = scmp.ne.s32.totalorder %s261_s26, %s2657_s17  ;;  %p2663_p5 = scmp.lt.s32.totalorder %s2657_s17, %s2657_s17 }
 0x129   :  { %p2664_p6 = por %p2663_p5, %p2662_p4 }
 0x12b   :  { %p2665_p7 = pnand %p2664_p6, %p2658_p3 }
 0x12d   :  { %2668 = shalt.err (!%p2665_p7)
}
 0x12e   :  { %266 = dma.hbm_to_vmem [thread:$0]  %s2877_s5, 1024, %s261_s26, [#allocation23], %s2722_s15, %s2722_s15, %s2723_s30  }
 0x12f   :  { %2669 = dma.done.wait [#allocation3], 16  }
 0x130   :  { %2670 = vsyncadd [#allocation3], 4294967280 }
 0x131   :  { %2671 = dma.done.wait [#allocation5], 1040  }
 0x132   :  { %2672 = vsyncadd [#allocation5], 4294966256 }
 0x133   :  { %2673 = dma.done.wait [#allocation8], 32  }
 0x134   :  { %2674 = vsyncadd [#allocation8], 4294967264 }
 0x135   :  { %2675 = dma.done.wait [#allocation11], 1040  }
 0x136   :  { %2676 = vsyncadd [#allocation11], 4294966256 }
 0x137   :  { %2677 = dma.done.wait [#allocation14], 1040  }
 0x138   :  { %2678 = vsyncadd [#allocation14], 4294966256 }
 0x139   :  { %2679 = dma.done.wait [#allocation17], 1040  }
 0x13a   :  { %2680 = vsyncadd [#allocation17], 4294966256 }
 0x13b   :  { %2681 = dma.done.wait [#allocation20], 2048  }
 0x13c   :  { %2682 = vsyncadd [#allocation20], 4294965248 }
 0x13d   :  { %2683 = dma.done.wait [#allocation23], 2048  }
 0x13e   :  { %2684 = vsyncadd [#allocation23], 4294965248  ;;  %s3188_s13 = sld [smem:[#allocation34_spill]]  ;;  %v2732_v0 = vmov 0.0   ;;  %vm2733_vm0 = vmmov 0   ;;  %s3189_s5 = sld [smem:[#allocation33_spill]] }
 0x13f   :  { %1972 = vmatprep.subr.bf16.mxu0 %v2732_v0  ;;  %1988 = vmatprep.mubr.msk.bf16.mxu0 %vm2733_vm0, %v2732_v0  ;;  %s3190_s30 = sld [smem:[#allocation35_spill]]  ;;  %v2230_v19 = vld [vmem:[#allocation6] sm:$0xff]   ;;  %v2231_v20 = vld [vmem:[#allocation6 + $0x8] sm:$0xff]   ;;  %v2232_v21 = vld [vmem:[#allocation6 + $0x10] sm:$0xff]   ;;  %s3191_s1 = sld [smem:[#allocation36_spill]] }
 0x140   :  { %1992 = vmatprep.subr.bf16.mxu1 %v2732_v0  ;;  %2008 = vmatprep.mubr.msk.bf16.mxu1 %vm2733_vm0, %v2732_v0  ;;  %v2233_v22 = vld [vmem:[#allocation6 + $0x18] sm:$0xff]   ;;  %v2234_v23 = vld [vmem:[#allocation6 + $0x20] sm:$0xff]   ;;  %v2235_v24 = vld [vmem:[#allocation6 + $0x28] sm:$0xff]   ;;  %s3192_s19 = sld [smem:[#allocation37_spill]]  ;;  %s3193_s2 = sld [smem:[#allocation38_spill]] }
 0x141   :  { %1993 = vmatpush3.bf16.msra.mxu1 %v2230_v19  ;;  %v2236_v25 = vld [vmem:[#allocation6 + $0x30] sm:$0xff]   ;;  %v2237_v26 = vld [vmem:[#allocation6 + $0x38] sm:$0xff]   ;;  %v1782_v58 = vld [vmem:[#allocation7] ss:$0 sm:$0xff]  ;;  %s3196_s7 = sld [smem:[#allocation41_spill]]  ;;  %s3197_s21 = sld [smem:[#allocation42_spill]] }
 0x142   :  { %1994 = vmatprep.subr.bf16.mxu1 %v2732_v0  ;;  %v1780_v43 = vld [vmem:[#allocation2] ss:$0 sm:$0xff]  ;;  %v1781_v45 = vld [vmem:[#allocation4] ss:$0 sm:$0xff]  ;;  %s3198_s10 = sld [smem:[#allocation43_spill]]  ;;  %s3199_s25 = sld [smem:[#allocation44_spill]] }
 0x143   :  { %s3200_s11 = sld [smem:[#allocation45_spill]] }
 0x144   :  { %v2221_v1 = vld [vmem:[%s3188_s13] sm:$0xff]   ;;  %v2222_v2 = vld [vmem:[%s3188_s13 + $0x8] sm:$0xff]   ;;  %v2223_v3 = vld [vmem:[%s3188_s13 + $0x10] sm:$0xff]  }
 0x145   :  { %1973 = vmatpush3.bf16.msra.mxu0 %v2221_v1  ;;  %v2224_v4 = vld [vmem:[%s3188_s13 + $0x18] sm:$0xff]   ;;  %v2225_v5 = vld [vmem:[%s3188_s13 + $0x20] sm:$0xff]   ;;  %v2226_v6 = vld [vmem:[%s3188_s13 + $0x28] sm:$0xff]   ;;  %1995 = vmatpush3.bf16.msra.mxu1 %v2231_v20 }
 0x146   :  { %1974 = vmatprep.subr.bf16.mxu0 %v2732_v0  ;;  %v2227_v7 = vld [vmem:[%s3188_s13 + $0x30] sm:$0xff]   ;;  %v2228_v8 = vld [vmem:[%s3188_s13 + $0x38] sm:$0xff]   ;;  %v2999_v9 = vld [vmem:[%s3189_s5] sm:$0xff]   ;;  %1996 = vmatprep.subr.bf16.mxu1 %v2732_v0 }
 0x147   :  { %v1770_v10 = vld [vmem:[%s3190_s30] ss:$0 sm:$0xff] }
 0x149   :  { %1975 = vmatpush3.bf16.msra.mxu0 %v2222_v2  ;;  %1997 = vmatpush3.bf16.msra.mxu1 %v2232_v21 }
 0x14a   :  { %1976 = vmatprep.subr.bf16.mxu0 %v2732_v0  ;;  %1998 = vmatprep.subr.bf16.mxu1 %v2732_v0 }
 0x14d   :  { %1977 = vmatpush3.bf16.msra.mxu0 %v2223_v3  ;;  %1999 = vmatpush3.bf16.msra.mxu1 %v2233_v22 }
 0x14e   :  { %1978 = vmatprep.subr.bf16.mxu0 %v2732_v0  ;;  %2000 = vmatprep.subr.bf16.mxu1 %v2732_v0 }
 0x151   :  { %1979 = vmatpush3.bf16.msra.mxu0 %v2224_v4  ;;  %2001 = vmatpush3.bf16.msra.mxu1 %v2234_v23  ;;  %v2238_v4 = vld [vmem:[#allocation12] sm:$0xff]  }
 0x152   :  { %1980 = vmatprep.subr.bf16.mxu0 %v2732_v0  ;;  %2002 = vmatprep.subr.bf16.mxu1 %v2732_v0 }
 0x155   :  { %1981 = vmatpush3.bf16.msra.mxu0 %v2225_v5  ;;  %2003 = vmatpush3.bf16.msra.mxu1 %v2235_v24  ;;  %v2239_v5 = vld [vmem:[#allocation12 + $0x8] sm:$0xff]  }
 0x156   :  { %1982 = vmatprep.subr.bf16.mxu0 %v2732_v0  ;;  %2004 = vmatprep.subr.bf16.mxu1 %v2732_v0 }
 0x159   :  { %1983 = vmatpush3.bf16.msra.mxu0 %v2226_v6  ;;  %2005 = vmatpush3.bf16.msra.mxu1 %v2236_v25  ;;  %v2240_v6 = vld [vmem:[#allocation12 + $0x10] sm:$0xff]  }
 0x15a   :  { %1984 = vmatprep.subr.bf16.mxu0 %v2732_v0  ;;  %2006 = vmatprep.subr.bf16.mxu1 %v2732_v0 }
 0x15d   :  { %1985 = vmatpush3.bf16.msra.mxu0 %v2227_v7  ;;  %2007 = vmatpush3.bf16.msra.mxu1 %v2237_v26  ;;  %v2241_v7 = vld [vmem:[#allocation12 + $0x18] sm:$0xff]  }
 0x15e   :  { %1986 = vmatprep.subr.bf16.mxu0 %v2732_v0  ;;  %2032 = vmatprep.subr.bf16.mxu1 %v2732_v0 }
 0x161   :  { %1987 = vmatpush3.bf16.msra.mxu0 %v2228_v8  ;;  %v2242_v8 = vld [vmem:[#allocation12 + $0x20] sm:$0xff]  }
 0x162   :  { %2012 = vmatprep.subr.bf16.mxu0 %v2732_v0 }
 0x164   :  { %1989 = vmatmul.mubr.bf16.vlgmr.msra.gmra.mrb[0].mxu0 %v2999_v9 }
 0x165   :  { %2028 = vmatprep.mubr.msk.bf16.mxu0 %vm2733_vm0, %v2732_v0  ;;  %2013 = vmatpush3.bf16.msra.mxu0 %v2238_v4  ;;  %v2255_v4 = vld [vmem:[%s3191_s1 + $0x8] sm:$0xff]  }
 0x166   :  { %2014 = vmatprep.subr.bf16.mxu0 %v2732_v0 }
 0x169   :  { %2015 = vmatpush3.bf16.msra.mxu0 %v2239_v5  ;;  %v2256_v5 = vld [vmem:[%s3191_s1 + $0x10] sm:$0xff]  }
 0x16a   :  { %2016 = vmatprep.subr.bf16.mxu0 %v2732_v0 }
 0x16d   :  { %2017 = vmatpush3.bf16.msra.mxu0 %v2240_v6  ;;  %v2257_v6 = vld [vmem:[%s3191_s1 + $0x18] sm:$0xff]  }
 0x16e   :  { %2018 = vmatprep.subr.bf16.mxu0 %v2732_v0 }
 0x171   :  { %2019 = vmatpush3.bf16.msra.mxu0 %v2241_v7  ;;  %v2258_v7 = vld [vmem:[%s3191_s1 + $0x20] sm:$0xff]  }
 0x172   :  { %2020 = vmatprep.subr.bf16.mxu0 %v2732_v0 }
 0x175   :  { %2021 = vmatpush3.bf16.msra.mxu0 %v2242_v8  ;;  %v2259_v8 = vld [vmem:[%s3191_s1 + $0x28] sm:$0xff]  }
 0x176   :  { %2022 = vmatprep.subr.bf16.mxu0 %v2732_v0 }
 0x237   :  { %v428_v11 = vpop.f32.mrb[0].mxu0 }
 0x238   :  { %v429_v12 = vadd.f32 %v1770_v10, %v428_v11  ;;  %v1990_v13 = vpop.f32.mrb[1].mxu0  ;;  %v2244_v11 = vld [vmem:[#allocation12 + $0x30] sm:$0xff]  }
 0x239   :  { %v431_v14 = vpop.f32.mrb[2].mxu0  ;;  %v2246_v13 = vld [vmem:[#allocation15] sm:$0xff]  }
 0x23a   :  { %v432_v15 = vadd.f32 %v1770_v10, %v431_v14  ;;  %437 = vadd.xlane.f32.xlu0 %v429_v12  ;;  %v1991_v16 = vpop.f32.mrb[3].mxu0  ;;  %v441_v17 = vmul.f32 %v429_v12, %v429_v12  ;;  %v2243_v10 = vld [vmem:[#allocation12 + $0x28] sm:$0xff]  }
 0x23b   :  { %2023 = vmatpush3.bf16.msra.mxu0 %v2243_v10  ;;  %v2247_v14 = vld [vmem:[#allocation15 + $0x8] sm:$0xff]   ;;  %v2249_v16 = vld [vmem:[#allocation15 + $0x18] sm:$0xff]  }
 0x23c   :  { %443 = vadd.xlane.f32.xlu1 %v441_v17  ;;  %v442_v18 = vmul.f32 %v432_v15, %v432_v15  ;;  %2024 = vmatprep.subr.bf16.mxu0 %v2732_v0  ;;  %v2250_v17 = vld [vmem:[#allocation15 + $0x20] sm:$0xff]  }
 0x23d   :  { %v2260_v10 = vld [vmem:[%s3191_s1 + $0x30] sm:$0xff]  }
 0x23e   :  { %439 = vadd.xlane.f32.xlu0 %v432_v15 }
 0x23f   :  { %2025 = vmatpush3.bf16.msra.mxu0 %v2244_v11  ;;  %v2261_v11 = vld [vmem:[%s3191_s1 + $0x38] sm:$0xff]  }
 0x240   :  { %445 = vadd.xlane.f32.xlu1 %v442_v18  ;;  %2026 = vmatprep.subr.bf16.mxu0 %v2732_v0  ;;  %v2251_v18 = vld [vmem:[#allocation15 + $0x28] sm:$0xff]  }
 0x2c7   :  { %v438_v27 = vpop.xlane.xlu0 %437 }
 0x2c8   :  { %v447_v28 = vmul.f32 0.0078125, %v438_v27 }
 0x2c9   :  { %v444_v29 = vpop.xlane.xlu1 %443 }
 0x2ca   :  { %v451_v30 = vmul.f32 %v447_v28, %v447_v28  ;;  %v449_v31 = vmul.f32 0.0078125, %v444_v29  ;;  %v455_v41 = vsub.f32 %v429_v12, %v447_v28  ;;  %v2245_v12 = vld [vmem:[#allocation12 + $0x38] sm:$0xff]  }
 0x2cb   :  { %v440_v32 = vpop.xlane.xlu0 %439  ;;  %2027 = vmatpush3.bf16.msra.mxu0 %v2245_v12  ;;  %v1802_v12 = vld [vmem:[#allocation16] ss:$0 sm:$0xff] }
 0x2cc   :  { %v453_v33 = vsub.f32 %v449_v31, %v451_v30  ;;  %v448_v34 = vmul.f32 0.0078125, %v440_v32  ;;  %2052 = vmatprep.subr.bf16.mxu0 %v2732_v0 }
 0x2cd   :  { %v446_v35 = vpop.xlane.xlu1 %445 }
 0x2ce   :  { %v457_v36 = vadd.f32 1e-05, %v453_v33  ;;  %v452_v37 = vmul.f32 %v448_v34, %v448_v34  ;;  %v450_v38 = vmul.f32 0.0078125, %v446_v35  ;;  %v456_v46 = vsub.f32 %v432_v15, %v448_v34  ;;  %v2248_v15 = vld [vmem:[#allocation15 + $0x10] sm:$0xff]   ;;  %v1791_v35 = vld [vmem:[#allocation9] ss:$0 sm:$0xff] }
 0x2d0   :  { %2303 = vrsqrt.f32 %v457_v36  ;;  %v454_v39 = vsub.f32 %v450_v38, %v452_v37 }
 0x2d2   :  { %v458_v40 = vadd.f32 1e-05, %v454_v39  ;;  %v1792_v39 = vld [vmem:[#allocation10] ss:$0 sm:$0xff] }
 0x2d4   :  { %2305 = vrsqrt.f32 %v458_v40 }
 0x2da   :  { %v2304_v42 = vpop.eup %2303 }
 0x2db   :  { %v461_v44 = vmul.f32 %v2304_v42, %v455_v41 }
 0x2dd   :  { %v469_v47 = vmul.f32 %v1780_v43, %v461_v44 }
 0x2de   :  { %v2306_v48 = vpop.eup %2305 }
 0x2df   :  { %v462_v49 = vmul.f32 %v2306_v48, %v456_v46  ;;  %v477_v50 = vadd.f32 %v1781_v45, %v469_v47 }
 0x2e1   :  { %v470_v51 = vmul.f32 %v1780_v43, %v462_v49  ;;  %v481_v53 = vmul.f32 0.2, %v477_v50  ;;  %vm479_vm1 = vcmp.gt.f32.partialorder %v477_v50, 0.0 }
 0x2e3   :  { %v478_v52 = vadd.f32 %v1781_v45, %v470_v51  ;;  %v3015_v55 = vsel %vm479_vm1, %v477_v50, %v481_v53  ;;  %v2253_v53 = vld [vmem:[#allocation15 + $0x38] sm:$0xff]  }
 0x2e5   :  { %vm480_vm2 = vcmp.gt.f32.partialorder %v478_v52, 0.0  ;;  %v482_v54 = vmul.f32 0.2, %v478_v52 }
 0x2e7   :  { %v3017_v56 = vsel %vm480_vm2, %v478_v52, %v482_v54  ;;  %v2252_v52 = vld [vmem:[#allocation15 + $0x30] sm:$0xff]   ;;  %v1793_v54 = vld [vmem:[#allocation13] ss:$0 sm:$0xff] }
 0x2e8   :  { %v485_v57 = vpack.c.bf16 %v3017_v56, %v3015_v55 }
 0x2ea   :  { %2009 = vmatmul.mubr.bf16.vlgmr.msra.gmra.mrb[0].mxu1 %v485_v57 }
 0x2eb   :  { %2048 = vmatprep.mubr.msk.bf16.mxu1 %vm2733_vm0, %v2732_v0  ;;  %2033 = vmatpush3.bf16.msra.mxu1 %v2246_v13 }
 0x2ec   :  { %2034 = vmatprep.subr.bf16.mxu1 %v2732_v0 }
 0x2ef   :  { %2035 = vmatpush3.bf16.msra.mxu1 %v2247_v14 }
 0x2f0   :  { %2036 = vmatprep.subr.bf16.mxu1 %v2732_v0 }
 0x2f3   :  { %2037 = vmatpush3.bf16.msra.mxu1 %v2248_v15 }
 0x2f4   :  { %2038 = vmatprep.subr.bf16.mxu1 %v2732_v0 }
 0x2f7   :  { %2039 = vmatpush3.bf16.msra.mxu1 %v2249_v16 }
 0x2f8   :  { %2040 = vmatprep.subr.bf16.mxu1 %v2732_v0 }
 0x2fb   :  { %2041 = vmatpush3.bf16.msra.mxu1 %v2250_v17 }
 0x2fc   :  { %2042 = vmatprep.subr.bf16.mxu1 %v2732_v0 }
 0x2ff   :  { %2043 = vmatpush3.bf16.msra.mxu1 %v2251_v18 }
 0x300   :  { %2044 = vmatprep.subr.bf16.mxu1 %v2732_v0 }
 0x303   :  { %2045 = vmatpush3.bf16.msra.mxu1 %v2252_v52 }
 0x304   :  { %2046 = vmatprep.subr.bf16.mxu1 %v2732_v0 }
 0x307   :  { %2047 = vmatpush3.bf16.msra.mxu1 %v2253_v53 }
 0x308   :  { %2072 = vmatprep.subr.bf16.mxu1 %v2732_v0 }
 0x3bd   :  { %v591_v59 = vpop.f32.mrb[0].mxu1 }
 0x3be   :  { %v3023_v60 = vadd.f32 %v1782_v58, %v591_v59  ;;  %v2010_v61 = vpop.f32.mrb[1].mxu1 }
 0x3bf   :  { %v594_v62 = vpop.f32.mrb[2].mxu1 }
 0x3c0   :  { %v3025_v63 = vadd.f32 %v1782_v58, %v594_v62  ;;  %600 = vadd.xlane.f32.xlu0 %v3023_v60  ;;  %v2011_v1 = vpop.f32.mrb[3].mxu1  ;;  %v604_v2 = vmul.f32 %v3023_v60, %v3023_v60 }
 0x3c2   :  { %602 = vadd.xlane.f32.xlu1 %v3025_v63  ;;  %v605_v3 = vmul.f32 %v3025_v63, %v3025_v63 }
 0x3c4   :  { %606 = vadd.xlane.f32.xlu0 %v604_v2 }
 0x3c6   :  { %608 = vadd.xlane.f32.xlu1 %v605_v3  ;;  %v2254_v3 = vld [vmem:[%s3191_s1] sm:$0xff]  }
 0x44d   :  { %v601_v19 = vpop.xlane.xlu0 %600 }
 0x44e   :  { %v610_v20 = vmul.f32 0.0078125, %v601_v19 }
 0x44f   :  { %v603_v21 = vpop.xlane.xlu1 %602 }
 0x450   :  { %v611_v22 = vmul.f32 0.0078125, %v603_v21  ;;  %v614_v24 = vmul.f32 %v610_v20, %v610_v20  ;;  %v618_v33 = vsub.f32 %v3023_v60, %v610_v20 }
 0x451   :  { %v607_v23 = vpop.xlane.xlu0 %606 }
 0x452   :  { %v612_v25 = vmul.f32 0.0078125, %v607_v23  ;;  %v615_v27 = vmul.f32 %v611_v22, %v611_v22  ;;  %v619_v36 = vsub.f32 %v3025_v63, %v611_v22 }
 0x453   :  { %v609_v26 = vpop.xlane.xlu1 %608 }
 0x454   :  { %v616_v28 = vsub.f32 %v612_v25, %v614_v24  ;;  %v613_v29 = vmul.f32 0.0078125, %v609_v26 }
 0x456   :  { %v620_v30 = vadd.f32 1e-05, %v616_v28  ;;  %v617_v31 = vsub.f32 %v613_v29, %v615_v27 }
 0x458   :  { %2307 = vrsqrt.f32 %v620_v30  ;;  %v621_v32 = vadd.f32 1e-05, %v617_v31  ;;  %v2262_v30 = vld [vmem:[#allocation18] sm:$0xff]   ;;  %v2263_v31 = vld [vmem:[#allocation18 + $0x8] sm:$0xff]  }
 0x45a   :  { %2309 = vrsqrt.f32 %v621_v32  ;;  %v2264_v32 = vld [vmem:[#allocation18 + $0x10] sm:$0xff]  }
 0x462   :  { %v2308_v34 = vpop.eup %2307 }
 0x463   :  { %v624_v37 = vmul.f32 %v2308_v34, %v618_v33  ;;  %v2265_v33 = vld [vmem:[#allocation18 + $0x18] sm:$0xff]   ;;  %v2266_v34 = vld [vmem:[#allocation18 + $0x20] sm:$0xff]  }
 0x464   :  { %v2310_v38 = vpop.eup %2309 }
 0x465   :  { %v632_v40 = vmul.f32 %v1791_v35, %v624_v37  ;;  %v625_v41 = vmul.f32 %v2310_v38, %v619_v36  ;;  %v2268_v36 = vld [vmem:[#allocation18 + $0x30] sm:$0xff]  }
 0x466   :  { %v1813_v37 = vld [vmem:[%s3192_s19] ss:$0 sm:$0xff] }
 0x467   :  { %v633_v42 = vmul.f32 %v1791_v35, %v625_v41  ;;  %v640_v43 = vadd.f32 %v1792_v39, %v632_v40  ;;  %v2267_v35 = vld [vmem:[#allocation18 + $0x28] sm:$0xff]  }
 0x469   :  { %v641_v44 = vadd.f32 %v1792_v39, %v633_v42  ;;  %vm642_vm3 = vcmp.gt.f32.partialorder %v640_v43, 0.0  ;;  %v644_v45 = vmul.f32 0.2, %v640_v43 }
 0x46b   :  { %vm643_vm4 = vcmp.gt.f32.partialorder %v641_v44, 0.0  ;;  %v645_v46 = vmul.f32 0.2, %v641_v44  ;;  %v646_v47 = vsel %vm642_vm3, %v640_v43, %v644_v45 }
 0x46c   :  { %v3050_v49 = vadd.f32 %v646_v47, %v3015_v55 }
 0x46d   :  { %v647_v48 = vsel %vm643_vm4, %v641_v44, %v645_v46 }
 0x46e   :  { %v3053_v50 = vadd.f32 %v647_v48, %v3017_v56  ;;  %v2269_v48 = vld [vmem:[#allocation18 + $0x38] sm:$0xff]  }
 0x470   :  { %v650_v51 = vpack.c.bf16 %v3053_v50, %v3050_v49 }
 0x472   :  { %2029 = vmatmul.mubr.bf16.vlgmr.msra.gmra.mrb[4].mxu0 %v650_v51 }
 0x473   :  { %2068 = vmatprep.mubr.msk.bf16.mxu0 %vm2733_vm0, %v2732_v0  ;;  %2053 = vmatpush3.bf16.msra.mxu0 %v2254_v3 }
 0x474   :  { %2054 = vmatprep.subr.bf16.mxu0 %v2732_v0 }
 0x477   :  { %2055 = vmatpush3.bf16.msra.mxu0 %v2255_v4 }
 0x478   :  { %2056 = vmatprep.subr.bf16.mxu0 %v2732_v0 }
 0x47b   :  { %2057 = vmatpush3.bf16.msra.mxu0 %v2256_v5  ;;  %v2270_v5 = vld [vmem:[#allocation19] sm:$0xff]  }
 0x47c   :  { %2058 = vmatprep.subr.bf16.mxu0 %v2732_v0 }
 0x47f   :  { %2059 = vmatpush3.bf16.msra.mxu0 %v2257_v6  ;;  %v2271_v6 = vld [vmem:[#allocation19 + $0x8] sm:$0xff]  }
 0x480   :  { %2060 = vmatprep.subr.bf16.mxu0 %v2732_v0 }
 0x483   :  { %2061 = vmatpush3.bf16.msra.mxu0 %v2258_v7  ;;  %v2272_v7 = vld [vmem:[#allocation19 + $0x10] sm:$0xff]  }
 0x484   :  { %2062 = vmatprep.subr.bf16.mxu0 %v2732_v0 }
 0x487   :  { %2063 = vmatpush3.bf16.msra.mxu0 %v2259_v8  ;;  %v2273_v8 = vld [vmem:[#allocation19 + $0x18] sm:$0xff]  }
 0x488   :  { %2064 = vmatprep.subr.bf16.mxu0 %v2732_v0 }
 0x48b   :  { %2065 = vmatpush3.bf16.msra.mxu0 %v2260_v10  ;;  %v2274_v10 = vld [vmem:[#allocation19 + $0x20] sm:$0xff]  }
 0x48c   :  { %2066 = vmatprep.subr.bf16.mxu0 %v2732_v0 }
 0x48f   :  { %2067 = vmatpush3.bf16.msra.mxu0 %v2261_v11  ;;  %v2275_v11 = vld [vmem:[#allocation19 + $0x28] sm:$0xff]  }
 0x490   :  { %2092 = vmatprep.subr.bf16.mxu0 %v2732_v0 }
 0x545   :  { %v756_v55 = vpop.f32.mrb[4].mxu0 }
 0x546   :  { %v757_v56 = vadd.f32 %v1793_v54, %v756_v55  ;;  %v2030_v57 = vpop.f32.mrb[5].mxu0 }
 0x547   :  { %v759_v58 = vpop.f32.mrb[6].mxu0 }
 0x548   :  { %v765_v59 = vmul.f32 0.2, %v757_v56  ;;  %v760_v60 = vadd.f32 %v1793_v54, %v759_v58  ;;  %v2031_v61 = vpop.f32.mrb[7].mxu0  ;;  %vm763_vm5 = vcmp.gt.f32.partialorder %v757_v56, 0.0 }
 0x54a   :  { %vm764_vm6 = vcmp.gt.f32.partialorder %v760_v60, 0.0  ;;  %v766_v62 = vmul.f32 0.2, %v760_v60  ;;  %v767_v63 = vsel %vm763_vm5, %v757_v56, %v765_v59 }
 0x54c   :  { %v768_v1 = vsel %vm764_vm6, %v760_v60, %v766_v62  ;;  %v1822_v60 = vld [vmem:[%s3193_s2] ss:$0 sm:$0xff] }
 0x54d   :  { %v769_v2 = vpack.c.bf16 %v768_v1, %v767_v63 }
 0x54f   :  { %2049 = vmatmul.mubr.bf16.vlgmr.msra.gmra.mrb[4].mxu1 %v769_v2 }
 0x550   :  { %2088 = vmatprep.mubr.msk.bf16.mxu1 %vm2733_vm0, %v2732_v0  ;;  %2073 = vmatpush3.bf16.msra.mxu1 %v2262_v30 }
 0x551   :  { %2074 = vmatprep.subr.bf16.mxu1 %v2732_v0 }
 0x554   :  { %2075 = vmatpush3.bf16.msra.mxu1 %v2263_v31 }
 0x555   :  { %2076 = vmatprep.subr.bf16.mxu1 %v2732_v0 }
 0x558   :  { %2077 = vmatpush3.bf16.msra.mxu1 %v2264_v32 }
 0x559   :  { %2078 = vmatprep.subr.bf16.mxu1 %v2732_v0 }
 0x55c   :  { %2079 = vmatpush3.bf16.msra.mxu1 %v2265_v33 }
 0x55d   :  { %2080 = vmatprep.subr.bf16.mxu1 %v2732_v0 }
 0x560   :  { %2081 = vmatpush3.bf16.msra.mxu1 %v2266_v34 }
 0x561   :  { %2082 = vmatprep.subr.bf16.mxu1 %v2732_v0 }
 0x564   :  { %2083 = vmatpush3.bf16.msra.mxu1 %v2267_v35 }
 0x565   :  { %2084 = vmatprep.subr.bf16.mxu1 %v2732_v0 }
 0x568   :  { %2085 = vmatpush3.bf16.msra.mxu1 %v2268_v36 }
 0x569   :  { %2086 = vmatprep.subr.bf16.mxu1 %v2732_v0 }
 0x56c   :  { %2087 = vmatpush3.bf16.msra.mxu1 %v2269_v48 }
 0x56d   :  { %2112 = vmatprep.subr.bf16.mxu1 %v2732_v0 }
 0x622   :  { %v875_v13 = vpop.f32.mrb[4].mxu1 }
 0x623   :  { %v876_v14 = vadd.f32 %v1802_v12, %v875_v13  ;;  %v2050_v15 = vpop.f32.mrb[5].mxu1  ;;  %v2277_v13 = vld [vmem:[#allocation19 + $0x38] sm:$0xff]  }
 0x624   :  { %v878_v16 = vpop.f32.mrb[6].mxu1 }
 0x625   :  { %v1811_v17 = vmul.f32 -1.442695, %v876_v14  ;;  %v879_v18 = vadd.f32 %v1802_v12, %v878_v16  ;;  %v2051_v19 = vpop.f32.mrb[7].mxu1  ;;  %v2276_v12 = vld [vmem:[#allocation19 + $0x30] sm:$0xff]  }
 0x627   :  { %2311 = vpow2.f32 %v1811_v17  ;;  %v1812_v20 = vmul.f32 -1.442695, %v879_v18 }
 0x629   :  { %2313 = vpow2.f32 %v1812_v20 }
 0x631   :  { %v2312_v21 = vpop.eup %2311 }
 0x632   :  { %v888_v22 = vadd.f32 1.0, %v2312_v21 }
 0x633   :  { %v2314_v23 = vpop.eup %2313 }
 0x634   :  { %2315 = vrcp.f32 %v888_v22  ;;  %v889_v24 = vadd.f32 1.0, %v2314_v23 }
 0x636   :  { %2317 = vrcp.f32 %v889_v24 }
 0x63e   :  { %v2316_v25 = vpop.eup %2315 }
 0x63f   :  { %v894_v27 = vmul.f32 %v2316_v25, %v3050_v49  ;;  %v1009_v49 = vunpack.c.l.bf16 %v2999_v9 }
 0x640   :  { %v2318_v26 = vpop.eup %2317 }
 0x641   :  { %v895_v28 = vmul.f32 %v2318_v26, %v3053_v50  ;;  %v1010_v50 = vunpack.c.h.bf16 %v2999_v9 }
 0x643   :  { %v896_v29 = vpack.c.bf16 %v895_v28, %v894_v27 }
 0x645   :  { %2069 = vmatmul.mubr.bf16.vlgmr.msra.gmra.mrb[8].mxu0 %v896_v29 }
 0x646   :  { %2108 = vmatprep.mubr.msk.bf16.mxu0 %vm2733_vm0, %v2732_v0  ;;  %2093 = vmatpush3.bf16.msra.mxu0 %v2270_v5 }
 0x647   :  { %2094 = vmatprep.subr.bf16.mxu0 %v2732_v0 }
 0x64a   :  { %2095 = vmatpush3.bf16.msra.mxu0 %v2271_v6 }
 0x64b   :  { %2096 = vmatprep.subr.bf16.mxu0 %v2732_v0 }
 0x64e   :  { %2097 = vmatpush3.bf16.msra.mxu0 %v2272_v7 }
 0x64f   :  { %2098 = vmatprep.subr.bf16.mxu0 %v2732_v0 }
 0x652   :  { %2099 = vmatpush3.bf16.msra.mxu0 %v2273_v8 }
 0x653   :  { %2100 = vmatprep.subr.bf16.mxu0 %v2732_v0 }
 0x656   :  { %2101 = vmatpush3.bf16.msra.mxu0 %v2274_v10 }
 0x657   :  { %2102 = vmatprep.subr.bf16.mxu0 %v2732_v0 }
 0x65a   :  { %2103 = vmatpush3.bf16.msra.mxu0 %v2275_v11 }
 0x65b   :  { %2104 = vmatprep.subr.bf16.mxu0 %v2732_v0 }
 0x65e   :  { %2105 = vmatpush3.bf16.msra.mxu0 %v2276_v12 }
 0x65f   :  { %2106 = vmatprep.subr.bf16.mxu0 %v2732_v0 }
 0x662   :  { %2107 = vmatpush3.bf16.msra.mxu0 %v2277_v13 }
 0x663   :  { %2132 = vmatprep.subr.bf16.mxu0 %v2732_v0 }
 0x718   :  { %v1002_v38 = vpop.f32.mrb[8].mxu0 }
 0x719   :  { %v1003_v39 = vadd.f32 %v1813_v37, %v1002_v38  ;;  %v2070_v40 = vpop.f32.mrb[9].mxu0 }
 0x71a   :  { %v1005_v41 = vpop.f32.mrb[10].mxu0 }
 0x71b   :  { %v1011_v42 = vmul.f32 0.5, %v1003_v39  ;;  %1722 = vst [vmem:[%s2892_s12] sm:$0xff] %v1003_v39  ;;  %v1006_v43 = vadd.f32 %v1813_v37, %v1005_v41  ;;  %v2071_v44 = vpop.f32.mrb[11].mxu0 }
 0x71d   :  { %v1013_v45 = vmul.f32 1.442695, %v1011_v42  ;;  %v1012_v46 = vmul.f32 0.5, %v1006_v43  ;;  %1723 = vst [vmem:[%s2892_s12 + $0x8] sm:$0xff] %v1006_v43  ;;  %s3194_s12 = sld [smem:[#allocation39_spill]] }
 0x71f   :  { %2319 = vpow2.f32 %v1013_v45  ;;  %v1015_v47 = vmul.f32 1.442695, %v1012_v46  ;;  %v1833_v45 = vld [vmem:[%s3196_s7] ss:$0 sm:$0xff] }
 0x721   :  { %2321 = vpow2.f32 %v1015_v47 }
 0x723   :  { %v1831_v30 = vld [vmem:[%s3194_s12] ss:$0 sm:$0xff] }
 0x729   :  { %v2320_v51 = vpop.eup %2319 }
 0x72a   :  { %v1017_v52 = vmul.f32 %v2320_v51, %v1009_v49 }
 0x72b   :  { %v2322_v53 = vpop.eup %2321 }
 0x72c   :  { %1019 = vrot.lane.b32.xlu0 %v1017_v52, %s2722_s15  ;;  %v1018_v54 = vmul.f32 %v2322_v53, %v1010_v50 }
 0x72e   :  { %1021 = vrot.lane.b32.xlu1 %v1018_v54, %s2722_s15  ;;  %s3195_s15 = sld [smem:[#allocation40_spill]]  ;;  %v2278_v54 = vld [vmem:[#allocation21] sm:$0xff]  }
 0x734   :  { %v1832_v34 = vld [vmem:[%s3195_s15] ss:$0 sm:$0xff] }
 0x79e   :  { %v1020_v55 = vpop.permute.xlu0 %1019 }
 0x79f   :  { %v1023_v57 = vadd.f32 %v1020_v55, %v1003_v39  ;;  %v2279_v55 = vld [vmem:[#allocation21 + $0x8] sm:$0xff]  }
 0x7a0   :  { %v1022_v56 = vpop.permute.xlu1 %1021 }
 0x7a1   :  { %v1024_v58 = vadd.f32 %v1022_v56, %v1006_v43  ;;  %v2280_v56 = vld [vmem:[#allocation21 + $0x10] sm:$0xff]  }
 0x7a3   :  { %v1025_v59 = vpack.c.bf16 %v1024_v58, %v1023_v57  ;;  %v2281_v57 = vld [vmem:[#allocation21 + $0x18] sm:$0xff]   ;;  %v2282_v58 = vld [vmem:[#allocation21 + $0x20] sm:$0xff]  }
 0x7a5   :  { %2089 = vmatmul.mubr.bf16.vlgmr.msra.gmra.mrb[8].mxu1 %v1025_v59  ;;  %v2283_v59 = vld [vmem:[#allocation21 + $0x28] sm:$0xff]  }
 0x7a6   :  { %2128 = vmatprep.mubr.msk.bf16.mxu1 %vm2733_vm0, %v2732_v0  ;;  %2113 = vmatpush3.bf16.msra.mxu1 %v2278_v54  ;;  %v2296_v54 = vld [vmem:[#allocation24 + $0x10] sm:$0xff]  }
 0x7a7   :  { %2114 = vmatprep.subr.bf16.mxu1 %v2732_v0 }
 0x7aa   :  { %2115 = vmatpush3.bf16.msra.mxu1 %v2279_v55  ;;  %v2297_v55 = vld [vmem:[#allocation24 + $0x18] sm:$0xff]  }
 0x7ab   :  { %2116 = vmatprep.subr.bf16.mxu1 %v2732_v0 }
 0x7ae   :  { %2117 = vmatpush3.bf16.msra.mxu1 %v2280_v56  ;;  %v2298_v56 = vld [vmem:[#allocation24 + $0x20] sm:$0xff]  }
 0x7af   :  { %2118 = vmatprep.subr.bf16.mxu1 %v2732_v0 }
 0x7b2   :  { %2119 = vmatpush3.bf16.msra.mxu1 %v2281_v57  ;;  %v2299_v57 = vld [vmem:[#allocation24 + $0x28] sm:$0xff]  }
 0x7b3   :  { %2120 = vmatprep.subr.bf16.mxu1 %v2732_v0 }
 0x7b6   :  { %2121 = vmatpush3.bf16.msra.mxu1 %v2282_v58  ;;  %v2300_v58 = vld [vmem:[#allocation24 + $0x30] sm:$0xff]  }
 0x7b7   :  { %2122 = vmatprep.subr.bf16.mxu1 %v2732_v0 }
 0x7ba   :  { %2123 = vmatpush3.bf16.msra.mxu1 %v2283_v59  ;;  %v2301_v59 = vld [vmem:[#allocation24 + $0x38] sm:$0xff]  }
 0x7bb   :  { %2124 = vmatprep.subr.bf16.mxu1 %v2732_v0 }
 0x878   :  { %v1131_v61 = vpop.f32.mrb[8].mxu1 }
 0x879   :  { %v1132_v9 = vadd.f32 %v1822_v60, %v1131_v61  ;;  %v2090_v62 = vpop.f32.mrb[9].mxu1  ;;  %v2285_v61 = vld [vmem:[#allocation21 + $0x38] sm:$0xff]  }
 0x87a   :  { %v1134_v63 = vpop.f32.mrb[10].mxu1  ;;  %v2287_v62 = vld [vmem:[#allocation22 + $0x8] sm:$0xff]  }
 0x87b   :  { %v1135_v1 = vadd.f32 %v1822_v60, %v1134_v63  ;;  %1140 = vadd.xlane.f32.xlu1 %v1132_v9  ;;  %v2091_v2 = vpop.f32.mrb[11].mxu1  ;;  %v1144_v4 = vmul.f32 %v1132_v9, %v1132_v9  ;;  %v2284_v60 = vld [vmem:[#allocation21 + $0x30] sm:$0xff]  }
 0x87c   :  { %2125 = vmatpush3.bf16.msra.mxu1 %v2284_v60  ;;  %v2288_v63 = vld [vmem:[#allocation22 + $0x10] sm:$0xff]   ;;  %v2290_v2 = vld [vmem:[#allocation22 + $0x20] sm:$0xff]  }
 0x87d   :  { %1142 = vadd.xlane.f32.xlu0 %v1135_v1  ;;  %v1145_v3 = vmul.f32 %v1135_v1, %v1135_v1  ;;  %2126 = vmatprep.subr.bf16.mxu1 %v2732_v0  ;;  %v1853_v60 = vld [vmem:[%s3200_s11] ss:$0 sm:$0xff] }
 0x87f   :  { %1148 = vadd.xlane.f32.xlu1 %v1145_v3  ;;  %v2291_v3 = vld [vmem:[#allocation22 + $0x28] sm:$0xff]  }
 0x880   :  { %2127 = vmatpush3.bf16.msra.mxu1 %v2285_v61 }
 0x881   :  { %1146 = vadd.xlane.f32.xlu0 %v1144_v4  ;;  %2152 = vmatprep.subr.bf16.mxu1 %v2732_v0 }
 0x908   :  { %v1141_v14 = vpop.xlane.xlu1 %1140 }
 0x909   :  { %v1150_v16 = vmul.f32 0.0078125, %v1141_v14 }
 0x90a   :  { %v1143_v15 = vpop.xlane.xlu0 %1142 }
 0x90b   :  { %v1151_v17 = vmul.f32 0.0078125, %v1143_v15  ;;  %v1154_v22 = vmul.f32 %v1150_v16, %v1150_v16  ;;  %v1158_v31 = vsub.f32 %v1132_v9, %v1150_v16  ;;  %v2286_v9 = vld [vmem:[#allocation22] sm:$0xff]  }
 0x90c   :  { %v1149_v18 = vpop.xlane.xlu1 %1148 }
 0x90d   :  { %v1155_v19 = vmul.f32 %v1151_v17, %v1151_v17  ;;  %v1153_v20 = vmul.f32 0.0078125, %v1149_v18  ;;  %v1159_v28 = vsub.f32 %v1135_v1, %v1151_v17  ;;  %v2289_v1 = vld [vmem:[#allocation22 + $0x18] sm:$0xff]  }
 0x90e   :  { %v1147_v21 = vpop.xlane.xlu0 %1146 }
 0x90f   :  { %v1157_v23 = vsub.f32 %v1153_v20, %v1155_v19  ;;  %v1152_v24 = vmul.f32 0.0078125, %v1147_v21  ;;  %v1842_v21 = vld [vmem:[%s3197_s21] ss:$0 sm:$0xff] }
 0x911   :  { %v1161_v25 = vadd.f32 1e-05, %v1157_v23  ;;  %v1156_v26 = vsub.f32 %v1152_v24, %v1154_v22 }
 0x913   :  { %2323 = vrsqrt.f32 %v1161_v25  ;;  %v1160_v27 = vadd.f32 1e-05, %v1156_v26  ;;  %v1843_v25 = vld [vmem:[%s3198_s10] ss:$0 sm:$0xff] }
 0x915   :  { %2325 = vrsqrt.f32 %v1160_v27 }
 0x91d   :  { %v2324_v29 = vpop.eup %2323 }
 0x91e   :  { %v1165_v32 = vmul.f32 %v2324_v29, %v1159_v28 }
 0x91f   :  { %v2326_v33 = vpop.eup %2325 }
 0x920   :  { %v1164_v35 = vmul.f32 %v2326_v33, %v1158_v31  ;;  %v1173_v36 = vmul.f32 %v1831_v30, %v1165_v32 }
 0x922   :  { %v1172_v37 = vmul.f32 %v1831_v30, %v1164_v35  ;;  %v1181_v38 = vadd.f32 %v1832_v34, %v1173_v36 }
 0x924   :  { %v1180_v39 = vadd.f32 %v1832_v34, %v1172_v37  ;;  %v1185_v40 = vmul.f32 0.2, %v1181_v38  ;;  %vm1183_vm7 = vcmp.gt.f32.partialorder %v1181_v38, 0.0 }
 0x926   :  { %vm1182_vm8 = vcmp.gt.f32.partialorder %v1180_v39, 0.0  ;;  %v1184_v41 = vmul.f32 0.2, %v1180_v39  ;;  %v3113_v43 = vsel %vm1183_vm7, %v1181_v38, %v1185_v40  ;;  %v2292_v38 = vld [vmem:[#allocation22 + $0x30] sm:$0xff]  }
 0x927   :  { %v1844_v40 = vld [vmem:[%s3199_s25] ss:$0 sm:$0xff] }
 0x928   :  { %v3111_v42 = vsel %vm1182_vm8, %v1180_v39, %v1184_v41  ;;  %v2293_v39 = vld [vmem:[#allocation22 + $0x38] sm:$0xff]  }
 0x929   :  { %v1188_v44 = vpack.c.bf16 %v3113_v43, %v3111_v42 }
 0x92b   :  { %2109 = vmatmul.mubr.bf16.vlgmr.msra.gmra.mrb[12].mxu0 %v1188_v44 }
 0x92c   :  { %2148 = vmatprep.mubr.msk.bf16.mxu0 %vm2733_vm0, %v2732_v0  ;;  %2133 = vmatpush3.bf16.msra.mxu0 %v2286_v9 }
 0x92d   :  { %2134 = vmatprep.subr.bf16.mxu0 %v2732_v0 }
 0x930   :  { %2135 = vmatpush3.bf16.msra.mxu0 %v2287_v62 }
 0x931   :  { %2136 = vmatprep.subr.bf16.mxu0 %v2732_v0 }
 0x934   :  { %2137 = vmatpush3.bf16.msra.mxu0 %v2288_v63 }
 0x935   :  { %2138 = vmatprep.subr.bf16.mxu0 %v2732_v0 }
 0x938   :  { %2139 = vmatpush3.bf16.msra.mxu0 %v2289_v1 }
 0x939   :  { %2140 = vmatprep.subr.bf16.mxu0 %v2732_v0 }
 0x93c   :  { %2141 = vmatpush3.bf16.msra.mxu0 %v2290_v2 }
 0x93d   :  { %2142 = vmatprep.subr.bf16.mxu0 %v2732_v0 }
 0x940   :  { %2143 = vmatpush3.bf16.msra.mxu0 %v2291_v3 }
 0x941   :  { %2144 = vmatprep.subr.bf16.mxu0 %v2732_v0 }
 0x944   :  { %2145 = vmatpush3.bf16.msra.mxu0 %v2292_v38 }
 0x945   :  { %2146 = vmatprep.subr.bf16.mxu0 %v2732_v0 }
 0x948   :  { %2147 = vmatpush3.bf16.msra.mxu0 %v2293_v39 }
 0x9fe   :  { %v1294_v46 = vpop.f32.mrb[12].mxu0 }
 0x9ff   :  { %v3120_v47 = vadd.f32 %v1833_v45, %v1294_v46  ;;  %v2110_v48 = vpop.f32.mrb[13].mxu0 }
 0xa00   :  { %v1297_v49 = vpop.f32.mrb[14].mxu0 }
 0xa01   :  { %v3122_v50 = vadd.f32 %v1833_v45, %v1297_v49  ;;  %1303 = vadd.xlane.f32.xlu0 %v3120_v47  ;;  %v2111_v51 = vpop.f32.mrb[15].mxu0  ;;  %v1307_v52 = vmul.f32 %v3120_v47, %v3120_v47 }
 0xa03   :  { %1305 = vadd.xlane.f32.xlu1 %v3122_v50  ;;  %v1308_v53 = vmul.f32 %v3122_v50, %v3122_v50 }
 0xa05   :  { %1309 = vadd.xlane.f32.xlu0 %v1307_v52  ;;  %v2294_v52 = vld [vmem:[#allocation24] sm:$0xff]  }
 0xa07   :  { %1311 = vadd.xlane.f32.xlu1 %v1308_v53  ;;  %v2295_v53 = vld [vmem:[#allocation24 + $0x8] sm:$0xff]  }
 0xa8e   :  { %v1304_v4 = vpop.xlane.xlu0 %1303 }
 0xa8f   :  { %v1313_v5 = vmul.f32 0.0078125, %v1304_v4 }
 0xa90   :  { %v1306_v6 = vpop.xlane.xlu1 %1305 }
 0xa91   :  { %v1314_v7 = vmul.f32 0.0078125, %v1306_v6  ;;  %v1317_v10 = vmul.f32 %v1313_v5, %v1313_v5  ;;  %v1321_v19 = vsub.f32 %v3120_v47, %v1313_v5 }
 0xa92   :  { %v1310_v8 = vpop.xlane.xlu0 %1309 }
 0xa93   :  { %v1315_v11 = vmul.f32 0.0078125, %v1310_v8  ;;  %v1318_v13 = vmul.f32 %v1314_v7, %v1314_v7  ;;  %v1322_v22 = vsub.f32 %v3122_v50, %v1314_v7 }
 0xa94   :  { %v1312_v12 = vpop.xlane.xlu1 %1311 }
 0xa95   :  { %v1319_v14 = vsub.f32 %v1315_v11, %v1317_v10  ;;  %v1316_v15 = vmul.f32 0.0078125, %v1312_v12 }
 0xa97   :  { %v1323_v16 = vadd.f32 1e-05, %v1319_v14  ;;  %v1320_v17 = vsub.f32 %v1316_v15, %v1318_v13  ;;  %v1864_v14 = vld [vmem:[%s2882_s27] ss:$0 sm:$0xff] }
 0xa99   :  { %2327 = vrsqrt.f32 %v1323_v16  ;;  %v1324_v18 = vadd.f32 1e-05, %v1320_v17 }
 0xa9b   :  { %2329 = vrsqrt.f32 %v1324_v18 }
 0xaa3   :  { %v2328_v20 = vpop.eup %2327 }
 0xaa4   :  { %v1327_v23 = vmul.f32 %v2328_v20, %v1321_v19 }
 0xaa5   :  { %v2330_v24 = vpop.eup %2329 }
 0xaa6   :  { %v1335_v26 = vmul.f32 %v1842_v21, %v1327_v23  ;;  %v1328_v27 = vmul.f32 %v2330_v24, %v1322_v22 }
 0xaa8   :  { %v1336_v28 = vmul.f32 %v1842_v21, %v1328_v27  ;;  %v1343_v29 = vadd.f32 %v1843_v25, %v1335_v26 }
 0xaaa   :  { %v1344_v30 = vadd.f32 %v1843_v25, %v1336_v28  ;;  %vm1345_vm9 = vcmp.gt.f32.partialorder %v1343_v29, 0.0  ;;  %v1347_v31 = vmul.f32 0.2, %v1343_v29 }
 0xaac   :  { %vm1346_vm10 = vcmp.gt.f32.partialorder %v1344_v30, 0.0  ;;  %v1348_v32 = vmul.f32 0.2, %v1344_v30  ;;  %v1349_v33 = vsel %vm1345_vm9, %v1343_v29, %v1347_v31 }
 0xaad   :  { %v3149_v35 = vadd.f32 %v1349_v33, %v3111_v42 }
 0xaae   :  { %v1350_v34 = vsel %vm1346_vm10, %v1344_v30, %v1348_v32 }
 0xaaf   :  { %v3152_v36 = vadd.f32 %v1350_v34, %v3113_v43 }
 0xab1   :  { %v1353_v37 = vpack.c.bf16 %v3152_v36, %v3149_v35 }
 0xab3   :  { %2129 = vmatmul.mubr.bf16.vlgmr.msra.gmra.mrb[12].mxu1 %v1353_v37 }
 0xab4   :  { %2168 = vmatprep.mubr.msk.bf16.mxu1 %vm2733_vm0, %v2732_v0  ;;  %2153 = vmatpush3.bf16.msra.mxu1 %v2294_v52 }
 0xab5   :  { %2154 = vmatprep.subr.bf16.mxu1 %v2732_v0 }
 0xab8   :  { %2155 = vmatpush3.bf16.msra.mxu1 %v2295_v53 }
 0xab9   :  { %2156 = vmatprep.subr.bf16.mxu1 %v2732_v0 }
 0xabc   :  { %2157 = vmatpush3.bf16.msra.mxu1 %v2296_v54 }
 0xabd   :  { %2158 = vmatprep.subr.bf16.mxu1 %v2732_v0 }
 0xac0   :  { %2159 = vmatpush3.bf16.msra.mxu1 %v2297_v55 }
 0xac1   :  { %2160 = vmatprep.subr.bf16.mxu1 %v2732_v0 }
 0xac4   :  { %2161 = vmatpush3.bf16.msra.mxu1 %v2298_v56 }
 0xac5   :  { %2162 = vmatprep.subr.bf16.mxu1 %v2732_v0 }
 0xac8   :  { %2163 = vmatpush3.bf16.msra.mxu1 %v2299_v57 }
 0xac9   :  { %2164 = vmatprep.subr.bf16.mxu1 %v2732_v0 }
 0xacc   :  { %2165 = vmatpush3.bf16.msra.mxu1 %v2300_v58 }
 0xacd   :  { %2166 = vmatprep.subr.bf16.mxu1 %v2732_v0 }
 0xad0   :  { %2167 = vmatpush3.bf16.msra.mxu1 %v2301_v59 }
 0xb86   :  { %v1459_v41 = vpop.f32.mrb[12].mxu1 }
 0xb87   :  { %v1460_v42 = vadd.f32 %v1844_v40, %v1459_v41  ;;  %v2130_v44 = vpop.f32.mrb[13].mxu1 }
 0xb88   :  { %v1462_v45 = vpop.f32.mrb[14].mxu1 }
 0xb89   :  { %v1468_v43 = vmul.f32 0.2, %v1460_v42  ;;  %v1463_v46 = vadd.f32 %v1844_v40, %v1462_v45  ;;  %v2131_v47 = vpop.f32.mrb[15].mxu1  ;;  %vm1466_vm11 = vcmp.gt.f32.partialorder %v1460_v42, 0.0 }
 0xb8b   :  { %vm1467_vm12 = vcmp.gt.f32.partialorder %v1463_v46, 0.0  ;;  %v1469_v48 = vmul.f32 0.2, %v1463_v46  ;;  %v1470_v49 = vsel %vm1466_vm11, %v1460_v42, %v1468_v43 }
 0xb8d   :  { %v1471_v50 = vsel %vm1467_vm12, %v1463_v46, %v1469_v48 }
 0xb8e   :  { %v1472_v51 = vpack.c.bf16 %v1471_v50, %v1470_v49 }
 0xb90   :  { %2149 = vmatmul.mubr.bf16.vlgmr.msra.gmra.mrb[16].mxu0 %v1472_v51 }
 0xc63   :  { %v1578_v61 = vpop.f32.mrb[16].mxu0 }
 0xc64   :  { %v1579_v9 = vadd.f32 %v1853_v60, %v1578_v61  ;;  %v2150_v62 = vpop.f32.mrb[17].mxu0 }
 0xc65   :  { %v1581_v63 = vpop.f32.mrb[18].mxu0 }
 0xc66   :  { %v1862_v1 = vmul.f32 -1.442695, %v1579_v9  ;;  %v1582_v2 = vadd.f32 %v1853_v60, %v1581_v63  ;;  %v2151_v3 = vpop.f32.mrb[19].mxu0 }
 0xc68   :  { %2331 = vpow2.f32 %v1862_v1  ;;  %v1863_v4 = vmul.f32 -1.442695, %v1582_v2 }
 0xc6a   :  { %2333 = vpow2.f32 %v1863_v4 }
 0xc72   :  { %v2332_v5 = vpop.eup %2331 }
 0xc73   :  { %v1591_v6 = vadd.f32 1.0, %v2332_v5 }
 0xc74   :  { %v2334_v7 = vpop.eup %2333 }
 0xc75   :  { %2335 = vrcp.f32 %v1591_v6  ;;  %v1592_v8 = vadd.f32 1.0, %v2334_v7 }
 0xc77   :  { %2337 = vrcp.f32 %v1592_v8 }
 0xc7f   :  { %v2336_v0 = vpop.eup %2335 }
 0xc80   :  { %v1597_v11 = vmul.f32 %v2336_v0, %v3149_v35 }
 0xc81   :  { %v2338_v10 = vpop.eup %2337 }
 0xc82   :  { %v1598_v12 = vmul.f32 %v2338_v10, %v3152_v36 }
 0xc84   :  { %v1599_v13 = vpack.c.bf16 %v1598_v12, %v1597_v11 }
 0xc86   :  { %2169 = vmatmul.mubr.bf16.vlgmr.msra.gmra.mrb[16].mxu1 %v1599_v13 }
 0xd59   :  { %v1705_v15 = vpop.f32.mrb[16].mxu1 }
 0xd5a   :  { %v2170_v16 = vpop.f32.mrb[17].mxu1  ;;  %v1706_v18 = vadd.f32 %v1864_v14, %v1705_v15 }
 0xd5b   :  { %v1708_v17 = vpop.f32.mrb[18].mxu1 }
 0xd5c   :  { %v1709_v19 = vadd.f32 %v1864_v14, %v1708_v17  ;;  %v2171_v20 = vpop.f32.mrb[19].mxu1 }
 0xd5e   :  { %v1880_v21 = vpack.c.bf16 %v1709_v19, %v1706_v18 }
 0xd60   :  { %1881 = vst [vmem:[%s2887_s9] sm:$0xff] %v1880_v21  }
 0xd61   :  { %1732 = vsyncpa [#allocation3], 1 }
 0xd62   :  { %1733 = vsyncpa [#allocation5], 1 }
 0xd63   :  { %1734 = vsyncpa [#allocation8], 1 }
 0xd64   :  { %1735 = vsyncpa [#allocation11], 1 }
 0xd65   :  { %1736 = vsyncpa [#allocation14], 1 }
 0xd66   :  { %1737 = vsyncpa [#allocation17], 1 }
 0xd67   :  { %1738 = vsyncpa [#allocation20], 1 }
 0xd68   :  { %1739 = vsyncpa [#allocation23], 1 }

</bundles_post_ra>
